<compile_context>
chip_gen: v7x
topology: tpu7x:2x2x1
jax: 0.10.0
libtpu: 0.0.40
codegen_flags: <defaults>
</compile_context>

<pallas_src>
import functools
import math

import jax
import jax.numpy as jnp
from jax.experimental import pallas as pl
from jax.experimental.pallas import tpu as pltpu


# ----------------------------------------------------------------------------
# Config (small, consistent with the module's shapes)
# ----------------------------------------------------------------------------
BATCH = 2
SEQ = 8
HIDDEN = 32
NUM_HEADS = 2
HEAD_DIM = HIDDEN // NUM_HEADS          # 16
INTERMEDIATE = 64
VOCAB = 64
VOCAB_PAD = 128                          # lane-dense padded lm_head output
NUM_LAYERS = 2
NUM_TAGS = 2                             # 0 = DATA, 1 = QUERY
RMS_EPS = 1e-6
ROPE_THETA = 10000.0
LANES = 128
NEG_INF = -1e9


def _round_up(x, m):
    return (x + m - 1) // m * m


def _slab_layout(batch, seq):
    """Row offsets inside the packed f32 constant slab and bf16 weight slab."""
    m = batch * seq
    hm = NUM_HEADS * m
    c32 = {
        "cs": 0,                    # (M, 4D)   [cos|cos|sin|sin]
        "emb": m,                   # (M, 3D)   [tok | tag | tag_mask]
        "bias": 2 * m,              # (HM, HM)  additive attention bias
        "lns": 2 * m + hm,          # (2L+1, D) rmsnorm weights (ln1/ln2 ... lnf)
    }
    c32["rows"] = _round_up(c32["lns"] + 2 * NUM_LAYERS + 1, 8)
    w2 = {
        "lmh": 0,                                   # (D, VOCAB_PAD)
        "wgu": HIDDEN,                              # L x (D, 2I)
        "wo": HIDDEN + NUM_LAYERS * HIDDEN,         # L x (D, D)
        "wdn": HIDDEN + 2 * NUM_LAYERS * HIDDEN,    # L x (I, D)
    }
    w2["rows"] = w2["wdn"] + NUM_LAYERS * INTERMEDIATE
    return c32, w2


def _full_spec(shape):
    """BlockSpec covering the full array (single grid step)."""
    n = len(shape)
    return pl.BlockSpec(shape, lambda *_, n=n: (0,) * n)


# ----------------------------------------------------------------------------
# Fused whole-forward kernel
# ----------------------------------------------------------------------------
def fused_forward_kernel(c32_ref, wqkvr_ref, w2_ref, out_ref,
                         *, batch, seq, num_heads, head_dim, inter,
                         num_layers, eps):
    f32 = jnp.float32
    bf16 = jnp.bfloat16
    D = num_heads * head_dim
    I = inter
    M = batch * seq
    HM = num_heads * M
    c32, w2 = _slab_layout(batch, seq)

    # ---- one-time loads (loop invariant), hoisted out of the layer loop ----
    cos2 = c32_ref[c32["cs"]:c32["cs"] + M, 0:2 * D]          # (M, 2D)
    sin2 = c32_ref[c32["cs"]:c32["cs"] + M, 2 * D:4 * D]      # (M, 2D)
    tok = c32_ref[c32["emb"]:c32["emb"] + M, 0:D]             # (M, D)
    tag = c32_ref[c32["emb"]:c32["emb"] + M, D:2 * D]         # (M, D)
    tagm = c32_ref[c32["emb"]:c32["emb"] + M, 2 * D:3 * D]    # (M, D)
    bias = c32_ref[c32["bias"]:c32["bias"] + HM, 0:HM]        # (HM, HM) f32
    lmh = w2_ref[w2["lmh"]:w2["lmh"] + D, :]                  # (D, VOCAB_PAD)

    def rms(v, w):
        var = jnp.mean(v * v, axis=-1, keepdims=True)
        return v * jax.lax.rsqrt(var + eps) * w

    # inputs_embeds = token_embeds + tag_embeds.masked_fill(tag_mask==0, 0)
    x = tok + jnp.where(tagm != 0.0, tag, f32(0.0))           # (M, D)

    for l in range(num_layers):
        ln1 = c32_ref[c32["lns"] + 2 * l:c32["lns"] + 2 * l + 1, 0:D]
        ln2 = c32_ref[c32["lns"] + 2 * l + 1:c32["lns"] + 2 * l + 2, 0:D]
        wqkvr_l = wqkvr_ref[l]                                        # (D, 5D)
        wgu_l = w2_ref[w2["wgu"] + l * D:w2["wgu"] + (l + 1) * D, 0:2 * I]
        wo_l = w2_ref[w2["wo"] + l * D:w2["wo"] + (l + 1) * D, 0:D]
        wdn_l = w2_ref[w2["wdn"] + l * I:w2["wdn"] + (l + 1) * I, 0:D]

        # ---------------- self-attention (batched over batch x head) --------
        h1 = rms(x, ln1)
        # Fused projection [Wq*s | Wk | Wq@P*s | Wk@P | Wv]; P = rotate_half
        # permutation, s = 1/sqrt(Dh) folded into the weights (exact).
        qkvr = jnp.dot(h1.astype(bf16), wqkvr_l,
                       preferred_element_type=f32)                    # (M, 5D)
        # RoPE for q and k in one elementwise combine; single bf16 cast each.
        qk = (qkvr[:, 0:2 * D] * cos2 + qkvr[:, 2 * D:4 * D] * sin2).astype(bf16)
        v = qkvr[:, 4 * D:5 * D].astype(bf16)                 # lane-128 aligned

        # Stack heads along sublanes: row order (head, batch, seq).
        q_s = jnp.concatenate(
            [qk[:, h * head_dim:(h + 1) * head_dim] for h in range(num_heads)],
            axis=0)                                                   # (HM, Dh)
        k_s = jnp.concatenate(
            [qk[:, D + h * head_dim:D + (h + 1) * head_dim]
             for h in range(num_heads)], axis=0)                      # (HM, Dh)
        v_s = jnp.concatenate(
            [v[:, h * head_dim:(h + 1) * head_dim] for h in range(num_heads)],
            axis=0)                                                   # (HM, Dh)

        # One scores matmul for all (batch, head) blocks; additive bias masks
        # off-diagonal blocks + future + padded keys (built wrapper-side).
        s = jax.lax.dot_general(q_s, k_s, (((1,), (1,)), ((), ())),
                                preferred_element_type=f32)           # (HM, HM)
        s = s + bias
        s = s - jnp.max(s, axis=-1, keepdims=True)
        p = jnp.exp(s)
        p = p * pl.reciprocal(jnp.sum(p, axis=-1, keepdims=True), approx=True)
        o_s = jnp.dot(p.astype(bf16), v_s,
                      preferred_element_type=f32)                     # (HM, Dh)
        # Merge heads back to lanes -> one output-projection dot + residual.
        o = jnp.concatenate(
            [o_s[h * M:(h + 1) * M, :] for h in range(num_heads)], axis=1)
        x = x + jnp.dot(o.astype(bf16), wo_l, preferred_element_type=f32)

        # ---------------- MLP (SwiGLU), gate|up fused to 2I = 128 lanes -----
        h2 = rms(x, ln2)
        gu = jnp.dot(h2.astype(bf16), wgu_l,
                     preferred_element_type=f32)                      # (M, 2I)
        g = gu[:, 0:I]
        u = gu[:, I:2 * I]
        act = (g * jax.nn.sigmoid(g)) * u                  # SiLU(gate) * up
        x = x + jnp.dot(act.astype(bf16), wdn_l, preferred_element_type=f32)

    # Final norm + (padded, lane-dense) lm_head -> single unmasked 128-lane store.
    lnf = c32_ref[c32["lns"] + 2 * num_layers:
                  c32["lns"] + 2 * num_layers + 1, 0:D]
    hf = rms(x, lnf)
    out_ref[...] = jnp.dot(hf.astype(bf16), lmh, preferred_element_type=f32)


# ----------------------------------------------------------------------------
# RoPE tables / rotate_half permutation (wrapper-side one-time constants)
# ----------------------------------------------------------------------------
def rope_cos_sin(seq_len, dim, theta=ROPE_THETA):
    inv_freq = 1.0 / (theta ** (jnp.arange(0, dim, 2, dtype=jnp.float32) / dim))
    t = jnp.arange(seq_len, dtype=jnp.float32)
    freqs = jnp.outer(t, inv_freq)                  # (S, dim/2)
    emb = jnp.concatenate([freqs, freqs], axis=-1)  # (S, dim)
    return jnp.cos(emb), jnp.sin(emb)


def rotate_half_matrix(dh):
    """P such that (q @ P) == rotate_half(q) for a row vector q of size dh."""
    h = dh // 2
    eye = jnp.eye(h, dtype=jnp.float32)
    zeros = jnp.zeros((h, h), jnp.float32)
    top = jnp.concatenate([zeros, eye], axis=1)     # q[:h]  ->  cols h..dh-1
    bot = jnp.concatenate([-eye, zeros], axis=1)    # q[h:]  -> -cols 0..h-1
    return jnp.concatenate([top, bot], axis=0)


# ----------------------------------------------------------------------------
# Parameters (deterministic init, normal std=0.02; RMSNorm weights = 1)
# ----------------------------------------------------------------------------
def init_params(key):
    std = 0.02

    def nrm(k, shape):
        return (std * jax.random.normal(k, shape)).astype(jnp.float32)

    keys = jax.random.split(key, 3 + NUM_LAYERS)
    params = {
        "embed_tokens": nrm(keys[0], (VOCAB, HIDDEN)),
        "tag_embeddings": nrm(keys[1], (NUM_TAGS, HIDDEN)),  # DefenseTagEncoder
        "lm_head": nrm(keys[2], (HIDDEN, VOCAB)),
        "final_norm": jnp.ones((HIDDEN,), jnp.float32),
        "layers": [],
    }
    for l in range(NUM_LAYERS):
        lk = jax.random.split(keys[3 + l], 7)
        params["layers"].append({
            "input_ln": jnp.ones((HIDDEN,), jnp.float32),
            "post_ln": jnp.ones((HIDDEN,), jnp.float32),
            "wq": nrm(lk[0], (HIDDEN, HIDDEN)),
            "wk": nrm(lk[1], (HIDDEN, HIDDEN)),
            "wv": nrm(lk[2], (HIDDEN, HIDDEN)),
            "wo": nrm(lk[3], (HIDDEN, HIDDEN)),
            "w_gate": nrm(lk[4], (HIDDEN, INTERMEDIATE)),
            "w_up": nrm(lk[5], (HIDDEN, INTERMEDIATE)),
            "w_down": nrm(lk[6], (INTERMEDIATE, HIDDEN)),
        })
    return params


# ----------------------------------------------------------------------------
# Full forward (LlamaWithDefenseTags.forward)
# ----------------------------------------------------------------------------
def llama_with_defense_tags_forward(params, input_ids, attention_mask,
                                    tag_ids, tag_mask, labels=None):
    B, S = input_ids.shape
    D, H, Dh, I, L = HIDDEN, NUM_HEADS, HEAD_DIM, INTERMEDIATE, NUM_LAYERS
    M = B * S
    HM = H * M
    assert 4 * D <= LANES and HM <= LANES and 3 * D <= LANES
    c32l, w2l = _slab_layout(B, S)

    # ---- embedding gathers stay as JAX glue (vocab-table gather) ----
    tok = params["embed_tokens"][input_ids].reshape(M, D)
    tag = params["tag_embeddings"][tag_ids].reshape(M, D)
    tagm_b = jnp.broadcast_to(
        tag_mask.reshape(M, 1).astype(jnp.float32), (M, D))

    # ---- RoPE tables, tiled over heads / batch / (q,k) ----
    cos, sin = rope_cos_sin(S, Dh)                       # (S, Dh)
    cos_rows = jnp.tile(cos, (B, H))                     # (M, D)
    sin_rows = jnp.tile(sin, (B, H))                     # (M, D)
    cs = jnp.concatenate([cos_rows, cos_rows, sin_rows, sin_rows], axis=1)

    # ---- additive attention bias: block-diag(batch,head) + causal + padding ----
    r = jnp.arange(HM)[:, None]
    c = jnp.arange(HM)[None, :]
    same_block = (r // S) == (c // S)                    # same (head, batch)
    causal = (r % S) >= (c % S)
    key_valid = attention_mask.reshape(-1).astype(bool)[c % (B * S)]
    bias = jnp.where(same_block & causal & key_valid,
                     0.0, NEG_INF).astype(jnp.float32)   # (HM, HM)

    # ---- packed f32 constant slab ----
    lns = jnp.zeros((2 * L + 1, D), jnp.float32)
    for l in range(L):
        lns = lns.at[2 * l].set(params["layers"][l]["input_ln"])
        lns = lns.at[2 * l + 1].set(params["layers"][l]["post_ln"])
    lns = lns.at[2 * L].set(params["final_norm"])

    c32 = jnp.zeros((c32l["rows"], LANES), jnp.float32)
    c32 = c32.at[c32l["cs"]:c32l["cs"] + M, 0:4 * D].set(cs)
    c32 = c32.at[c32l["emb"]:c32l["emb"] + M, 0:D].set(tok)
    c32 = c32.at[c32l["emb"]:c32l["emb"] + M, D:2 * D].set(tag)
    c32 = c32.at[c32l["emb"]:c32l["emb"] + M, 2 * D:3 * D].set(tagm_b)
    c32 = c32.at[c32l["bias"]:c32l["bias"] + HM, 0:HM].set(bias)
    c32 = c32.at[c32l["lns"]:c32l["lns"] + 2 * L + 1, 0:D].set(lns)

    # ---- packed bf16 weights ----
    scale = 1.0 / math.sqrt(Dh)                          # 0.25: exact pow2
    P = jnp.kron(jnp.eye(H, dtype=jnp.float32), rotate_half_matrix(Dh))
    wqkvr = []
    w2 = jnp.zeros((w2l["rows"], LANES), jnp.float32)
    w2 = w2.at[w2l["lmh"]:w2l["lmh"] + D, 0:VOCAB].set(params["lm_head"])
    for l, lyr in enumerate(params["layers"]):
        wq, wk = lyr["wq"], lyr["wk"]
        wqkvr.append(jnp.concatenate(
            [wq * scale, wk, (wq @ P) * scale, wk @ P, lyr["wv"]], axis=1))
        w2 = w2.at[w2l["wgu"] + l * D:w2l["wgu"] + (l + 1) * D, 0:2 * I].set(
            jnp.concatenate([lyr["w_gate"], lyr["w_up"]], axis=1))
        w2 = w2.at[w2l["wo"] + l * D:w2l["wo"] + (l + 1) * D, 0:D].set(
            lyr["wo"])
        w2 = w2.at[w2l["wdn"] + l * I:w2l["wdn"] + (l + 1) * I, 0:D].set(
            lyr["w_down"])
    wqkvr = jnp.stack(wqkvr).astype(jnp.bfloat16)        # (L, D, 5D)
    w2 = w2.astype(jnp.bfloat16)                         # (rows, 128)

    kernel = functools.partial(
        fused_forward_kernel, batch=B, seq=S, num_heads=H, head_dim=Dh,
        inter=I, num_layers=L, eps=RMS_EPS)

    in_arrays = [c32, wqkvr, w2]
    logits_pad = pl.pallas_call(
        kernel,
        out_shape=jax.ShapeDtypeStruct((M, VOCAB_PAD), jnp.float32),
        grid=(1,),
        in_specs=[_full_spec(a.shape) for a in in_arrays],
        out_specs=_full_spec((M, VOCAB_PAD)),
        compiler_params=pltpu.CompilerParams(
            dimension_semantics=("arbitrary",),
            vmem_limit_bytes=16 * 1024 * 1024),
    )(*in_arrays)

    logits = logits_pad[:, :VOCAB].reshape(B, S, VOCAB)

    loss = None
    if labels is not None:
        # Shifted causal-LM cross-entropy, ignore_index = -100 (JAX glue).
        shift_logits = logits[:, :-1, :]
        shift_labels = labels[:, 1:]
        valid = shift_labels != -100
        logp = jax.nn.log_softmax(shift_logits, axis=-1)
        tgt = jnp.where(valid, shift_labels, 0)
        nll = -jnp.take_along_axis(logp, tgt[..., None], axis=-1)[..., 0]
        loss = jnp.sum(nll * valid) / jnp.maximum(jnp.sum(valid), 1)

    return {"logits": logits, "loss": loss}


# TODO(synk): autoregressive generate() loop and HF checkpoint/tokenizer
# loading are not reproduced (pretrained weights replaced by synthetic init).


if __name__ == "__main__":
    key = jax.random.PRNGKey(0)
    pkey, k_ids, k_tags = jax.random.split(key, 3)

    params = init_params(pkey)

    input_ids = jax.random.randint(k_ids, (BATCH, SEQ), 0, VOCAB, jnp.int32)
    tag_ids = jax.random.randint(k_tags, (BATCH, SEQ), 0, NUM_TAGS, jnp.int32)
    # attention_mask: second sequence has 2 padding positions at the end.
    attention_mask = jnp.array(
        [[1] * SEQ, [1] * (SEQ - 2) + [0, 0]], dtype=jnp.int32)
    # tag_mask: first sequence has one invalid tag position.
    tag_mask = jnp.array(
        [[1] * (SEQ - 1) + [0], [1] * SEQ], dtype=jnp.int32)

    out = llama_with_defense_tags_forward(
        params, input_ids, attention_mask, tag_ids, tag_mask, labels=None)
    logits = jax.block_until_ready(out["logits"])

    assert logits.shape == (BATCH, SEQ, VOCAB)
    assert bool(jnp.all(jnp.isfinite(logits)))
    print("KERNEL_OK")
</pallas_src>

<mosaic_0001>
module attributes {stable_mosaic.version = 11 : i64} {
  func.func @fused_forward_kernel(%arg0: i32, %arg1: memref<72x128xf32, #tpu.memory_space<vmem>>, %arg2: memref<2x32x160xbf16, #tpu.memory_space<vmem>>, %arg3: memref<288x128xbf16, #tpu.memory_space<vmem>>, %arg4: memref<16x128xf32, #tpu.memory_space<vmem>>) attributes {dimension_semantics = [#tpu.dimension_semantics<arbitrary>], iteration_bounds = array<i64: 1>, scalar_prefetch = 0 : i64, scratch_operands = 0 : i64, tpu.core_type = #tpu.core_type<tc>, window_params = [{pipeline_mode = #tpu.pipeline_mode<synchronous>, transform_indices = @transform_0, window_bounds = array<i64: 72, 128>}, {pipeline_mode = #tpu.pipeline_mode<synchronous>, transform_indices = @transform_1, window_bounds = array<i64: 2, 32, 160>}, {pipeline_mode = #tpu.pipeline_mode<synchronous>, transform_indices = @transform_2, window_bounds = array<i64: 288, 128>}, {pipeline_mode = #tpu.pipeline_mode<synchronous>, transform_indices = @transform_3, window_bounds = array<i64: 16, 128>}]} {
    %c0 = arith.constant 0 : index
    %c0_0 = arith.constant 0 : index
    %0 = vector.load %arg1[%c0, %c0_0] : memref<72x128xf32, #tpu.memory_space<vmem>>, vector<16x64xf32>
    %c0_1 = arith.constant 0 : index
    %c64 = arith.constant 64 : index
    %1 = vector.load %arg1[%c0_1, %c64] : memref<72x128xf32, #tpu.memory_space<vmem>>, vector<16x64xf32>
    %c16 = arith.constant 16 : index
    %c0_2 = arith.constant 0 : index
    %2 = vector.load %arg1[%c16, %c0_2] : memref<72x128xf32, #tpu.memory_space<vmem>>, vector<16x32xf32>
    %c16_3 = arith.constant 16 : index
    %c32 = arith.constant 32 : index
    %3 = vector.load %arg1[%c16_3, %c32] : memref<72x128xf32, #tpu.memory_space<vmem>>, vector<16x32xf32>
    %c16_4 = arith.constant 16 : index
    %c64_5 = arith.constant 64 : index
    %4 = vector.load %arg1[%c16_4, %c64_5] : memref<72x128xf32, #tpu.memory_space<vmem>>, vector<16x32xf32>
    %c32_6 = arith.constant 32 : index
    %c0_7 = arith.constant 0 : index
    %5 = vector.load %arg1[%c32_6, %c0_7] : memref<72x128xf32, #tpu.memory_space<vmem>>, vector<32x32xf32>
    %c0_8 = arith.constant 0 : index
    %c0_9 = arith.constant 0 : index
    %6 = vector.load %arg3[%c0_8, %c0_9] : memref<288x128xbf16, #tpu.memory_space<vmem>>, vector<32x128xbf16>
    %cst = arith.constant 0.000000e+00 : f32
    %7 = vector.broadcast %cst : f32 to vector<16x32xf32>
    %8 = arith.cmpf one, %4, %7 : vector<16x32xf32>
    %cst_10 = arith.constant 0.000000e+00 : f32
    %9 = vector.broadcast %cst_10 : f32 to vector<16x32xf32>
    %10 = arith.select %8, %3, %9 : vector<16x32xi1>, vector<16x32xf32>
    %11 = arith.addf %2, %10 : vector<16x32xf32>
    %c64_11 = arith.constant 64 : index
    %c0_12 = arith.constant 0 : index
    %12 = vector.load %arg1[%c64_11, %c0_12] : memref<72x128xf32, #tpu.memory_space<vmem>>, vector<1x32xf32>
    %c65 = arith.constant 65 : index
    %c0_13 = arith.constant 0 : index
    %13 = vector.load %arg1[%c65, %c0_13] : memref<72x128xf32, #tpu.memory_space<vmem>>, vector<1x32xf32>
    %c0_14 = arith.constant 0 : index
    %c0_15 = arith.constant 0 : index
    %c0_16 = arith.constant 0 : index
    %14 = vector.load %arg2[%c0_14, %c0_15, %c0_16] : memref<2x32x160xbf16, #tpu.memory_space<vmem>>, vector<1x32x160xbf16>
    %15 = vector.shape_cast %14 : vector<1x32x160xbf16> to vector<32x160xbf16>
    %c32_17 = arith.constant 32 : index
    %c0_18 = arith.constant 0 : index
    %16 = vector.load %arg3[%c32_17, %c0_18] : memref<288x128xbf16, #tpu.memory_space<vmem>>, vector<32x128xbf16>
    %c96 = arith.constant 96 : index
    %c0_19 = arith.constant 0 : index
    %17 = vector.load %arg3[%c96, %c0_19] : memref<288x128xbf16, #tpu.memory_space<vmem>>, vector<32x32xbf16>
    %c160 = arith.constant 160 : index
    %c0_20 = arith.constant 0 : index
    %18 = vector.load %arg3[%c160, %c0_20] : memref<288x128xbf16, #tpu.memory_space<vmem>>, vector<64x32xbf16>
    %19 = arith.mulf %11, %11 : vector<16x32xf32>
    %cst_21 = arith.constant dense<0.000000e+00> : vector<16xf32>
    %20 = vector.multi_reduction <add>, %19, %cst_21 [1] : vector<16x32xf32> to vector<16xf32>
    %21 = vector.shape_cast %20 : vector<16xf32> to vector<16x1xf32>
    %cst_22 = arith.constant 3.200000e+01 : f32
    %22 = vector.broadcast %cst_22 : f32 to vector<16x1xf32>
    %23 = arith.divf %21, %22 : vector<16x1xf32>
    %cst_23 = arith.constant 9.99999997E-7 : f32
    %24 = vector.broadcast %cst_23 : f32 to vector<16x1xf32>
    %25 = arith.addf %23, %24 : vector<16x1xf32>
    %26 = math.rsqrt %25 : vector<16x1xf32>
    %27 = vector.broadcast %26 : vector<16x1xf32> to vector<16x32xf32>
    %28 = arith.mulf %11, %27 : vector<16x32xf32>
    %29 = vector.broadcast %12 : vector<1x32xf32> to vector<16x32xf32>
    %30 = arith.mulf %28, %29 : vector<16x32xf32>
    %31 = arith.truncf %30 : vector<16x32xf32> to vector<16x32xbf16>
    %cst_24 = arith.constant dense<0.000000e+00> : vector<16x160xf32>
    %32 = tpu.matmul %31, %15, %cst_24 {dimension_numbers = #tpu.dot_dimension_numbers<[1], [0], [0], [1], [0, 0, 1, 1], [], []>} : vector<16x32xbf16>, vector<32x160xbf16>, vector<16x160xf32> -> vector<16x160xf32>
    %33 = vector.extract_strided_slice %32 {offsets = [0, 0], sizes = [16, 64], strides = [1, 1]} : vector<16x160xf32> to vector<16x64xf32>
    %34 = arith.mulf %33, %0 : vector<16x64xf32>
    %35 = vector.extract_strided_slice %32 {offsets = [0, 64], sizes = [16, 64], strides = [1, 1]} : vector<16x160xf32> to vector<16x64xf32>
    %36 = arith.mulf %35, %1 : vector<16x64xf32>
    %37 = arith.addf %34, %36 : vector<16x64xf32>
    %38 = arith.truncf %37 : vector<16x64xf32> to vector<16x64xbf16>
    %39 = vector.extract_strided_slice %32 {offsets = [0, 128], sizes = [16, 32], strides = [1, 1]} : vector<16x160xf32> to vector<16x32xf32>
    %40 = arith.truncf %39 : vector<16x32xf32> to vector<16x32xbf16>
    %41 = vector.extract_strided_slice %38 {offsets = [0, 0], sizes = [16, 16], strides = [1, 1]} : vector<16x64xbf16> to vector<16x16xbf16>
    %42 = vector.extract_strided_slice %38 {offsets = [0, 16], sizes = [16, 16], strides = [1, 1]} : vector<16x64xbf16> to vector<16x16xbf16>
    %43 = tpu.concatenate %41, %42 in 0 : vector<16x16xbf16>, vector<16x16xbf16> -> vector<32x16xbf16>
    %44 = vector.extract_strided_slice %38 {offsets = [0, 32], sizes = [16, 16], strides = [1, 1]} : vector<16x64xbf16> to vector<16x16xbf16>
    %45 = vector.extract_strided_slice %38 {offsets = [0, 48], sizes = [16, 16], strides = [1, 1]} : vector<16x64xbf16> to vector<16x16xbf16>
    %46 = tpu.concatenate %44, %45 in 0 : vector<16x16xbf16>, vector<16x16xbf16> -> vector<32x16xbf16>
    %47 = vector.extract_strided_slice %40 {offsets = [0, 0], sizes = [16, 16], strides = [1, 1]} : vector<16x32xbf16> to vector<16x16xbf16>
    %48 = vector.extract_strided_slice %40 {offsets = [0, 16], sizes = [16, 16], strides = [1, 1]} : vector<16x32xbf16> to vector<16x16xbf16>
    %49 = tpu.concatenate %47, %48 in 0 : vector<16x16xbf16>, vector<16x16xbf16> -> vector<32x16xbf16>
    %cst_25 = arith.constant dense<0.000000e+00> : vector<32x32xf32>
    %50 = tpu.matmul %43, %46, %cst_25 {dimension_numbers = #tpu.dot_dimension_numbers<[1], [1], [0], [0], [0, 0, 1, 0], [], []>} : vector<32x16xbf16>, vector<32x16xbf16>, vector<32x32xf32> -> vector<32x32xf32>
    %51 = arith.addf %50, %5 : vector<32x32xf32>
    %cst_26 = arith.constant dense<0xFF800000> : vector<32xf32>
    %52 = vector.multi_reduction <maximumf>, %51, %cst_26 [1] : vector<32x32xf32> to vector<32xf32>
    %53 = vector.shape_cast %52 : vector<32xf32> to vector<32x1xf32>
    %54 = vector.broadcast %53 : vector<32x1xf32> to vector<32x32xf32>
    %55 = arith.subf %51, %54 : vector<32x32xf32>
    %56 = math.exp %55 : vector<32x32xf32>
    %cst_27 = arith.constant dense<0.000000e+00> : vector<32xf32>
    %57 = vector.multi_reduction <add>, %56, %cst_27 [1] : vector<32x32xf32> to vector<32xf32>
    %58 = vector.shape_cast %57 : vector<32xf32> to vector<32x1xf32>
    %59 = tpu.reciprocal %58 {approx = true} : vector<32x1xf32> -> vector<32x1xf32>
    %60 = vector.broadcast %59 : vector<32x1xf32> to vector<32x32xf32>
    %61 = arith.mulf %56, %60 : vector<32x32xf32>
    %62 = arith.truncf %61 : vector<32x32xf32> to vector<32x32xbf16>
    %cst_28 = arith.constant dense<0.000000e+00> : vector<32x16xf32>
    %63 = tpu.matmul %62, %49, %cst_28 {dimension_numbers = #tpu.dot_dimension_numbers<[1], [0], [0], [1], [0, 0, 1, 1], [], []>} : vector<32x32xbf16>, vector<32x16xbf16>, vector<32x16xf32> -> vector<32x16xf32>
    %64 = vector.extract_strided_slice %63 {offsets = [0, 0], sizes = [16, 16], strides = [1, 1]} : vector<32x16xf32> to vector<16x16xf32>
    %65 = vector.extract_strided_slice %63 {offsets = [16, 0], sizes = [16, 16], strides = [1, 1]} : vector<32x16xf32> to vector<16x16xf32>
    %66 = tpu.concatenate %64, %65 in 1 : vector<16x16xf32>, vector<16x16xf32> -> vector<16x32xf32>
    %67 = arith.truncf %66 : vector<16x32xf32> to vector<16x32xbf16>
    %cst_29 = arith.constant dense<0.000000e+00> : vector<16x32xf32>
    %68 = tpu.matmul %67, %17, %cst_29 {dimension_numbers = #tpu.dot_dimension_numbers<[1], [0], [0], [1], [0, 0, 1, 1], [], []>} : vector<16x32xbf16>, vector<32x32xbf16>, vector<16x32xf32> -> vector<16x32xf32>
    %69 = arith.addf %11, %68 : vector<16x32xf32>
    %70 = arith.mulf %69, %69 : vector<16x32xf32>
    %cst_30 = arith.constant dense<0.000000e+00> : vector<16xf32>
    %71 = vector.multi_reduction <add>, %70, %cst_30 [1] : vector<16x32xf32> to vector<16xf32>
    %72 = vector.shape_cast %71 : vector<16xf32> to vector<16x1xf32>
    %cst_31 = arith.constant 3.200000e+01 : f32
    %73 = vector.broadcast %cst_31 : f32 to vector<16x1xf32>
    %74 = arith.divf %72, %73 : vector<16x1xf32>
    %cst_32 = arith.constant 9.99999997E-7 : f32
    %75 = vector.broadcast %cst_32 : f32 to vector<16x1xf32>
    %76 = arith.addf %74, %75 : vector<16x1xf32>
    %77 = math.rsqrt %76 : vector<16x1xf32>
    %78 = vector.broadcast %77 : vector<16x1xf32> to vector<16x32xf32>
    %79 = arith.mulf %69, %78 : vector<16x32xf32>
    %80 = vector.broadcast %13 : vector<1x32xf32> to vector<16x32xf32>
    %81 = arith.mulf %79, %80 : vector<16x32xf32>
    %82 = arith.truncf %81 : vector<16x32xf32> to vector<16x32xbf16>
    %cst_33 = arith.constant dense<0.000000e+00> : vector<16x128xf32>
    %83 = tpu.matmul %82, %16, %cst_33 {dimension_numbers = #tpu.dot_dimension_numbers<[1], [0], [0], [1], [0, 0, 1, 1], [], []>} : vector<16x32xbf16>, vector<32x128xbf16>, vector<16x128xf32> -> vector<16x128xf32>
    %84 = vector.extract_strided_slice %83 {offsets = [0, 0], sizes = [16, 64], strides = [1, 1]} : vector<16x128xf32> to vector<16x64xf32>
    %85 = vector.extract_strided_slice %83 {offsets = [0, 64], sizes = [16, 64], strides = [1, 1]} : vector<16x128xf32> to vector<16x64xf32>
    %86 = arith.negf %84 : vector<16x64xf32>
    %87 = math.exp %86 : vector<16x64xf32>
    %cst_34 = arith.constant 1.000000e+00 : f32
    %88 = vector.broadcast %cst_34 : f32 to vector<16x64xf32>
    %89 = arith.addf %88, %87 : vector<16x64xf32>
    %90 = arith.divf %88, %89 : vector<16x64xf32>
    %91 = arith.mulf %84, %90 : vector<16x64xf32>
    %92 = arith.mulf %91, %85 : vector<16x64xf32>
    %93 = arith.truncf %92 : vector<16x64xf32> to vector<16x64xbf16>
    %cst_35 = arith.constant dense<0.000000e+00> : vector<16x32xf32>
    %94 = tpu.matmul %93, %18, %cst_35 {dimension_numbers = #tpu.dot_dimension_numbers<[1], [0], [0], [1], [0, 0, 1, 1], [], []>} : vector<16x64xbf16>, vector<64x32xbf16>, vector<16x32xf32> -> vector<16x32xf32>
    %95 = arith.addf %69, %94 : vector<16x32xf32>
    %c66 = arith.constant 66 : index
    %c0_36 = arith.constant 0 : index
    %96 = vector.load %arg1[%c66, %c0_36] : memref<72x128xf32, #tpu.memory_space<vmem>>, vector<1x32xf32>
    %c67 = arith.constant 67 : index
    %c0_37 = arith.constant 0 : index
    %97 = vector.load %arg1[%c67, %c0_37] : memref<72x128xf32, #tpu.memory_space<vmem>>, vector<1x32xf32>
    %c1 = arith.constant 1 : index
    %c0_38 = arith.constant 0 : index
    %c0_39 = arith.constant 0 : index
    %98 = vector.load %arg2[%c1, %c0_38, %c0_39] : memref<2x32x160xbf16, #tpu.memory_space<vmem>>, vector<1x32x160xbf16>
    %99 = vector.shape_cast %98 : vector<1x32x160xbf16> to vector<32x160xbf16>
    %c64_40 = arith.constant 64 : index
    %c0_41 = arith.constant 0 : index
    %100 = vector.load %arg3[%c64_40, %c0_41] : memref<288x128xbf16, #tpu.memory_space<vmem>>, vector<32x128xbf16>
    %c128 = arith.constant 128 : index
    %c0_42 = arith.constant 0 : index
    %101 = vector.load %arg3[%c128, %c0_42] : memref<288x128xbf16, #tpu.memory_space<vmem>>, vector<32x32xbf16>
    %c224 = arith.constant 224 : index
    %c0_43 = arith.constant 0 : index
    %102 = vector.load %arg3[%c224, %c0_43] : memref<288x128xbf16, #tpu.memory_space<vmem>>, vector<64x32xbf16>
    %103 = arith.mulf %95, %95 : vector<16x32xf32>
    %cst_44 = arith.constant dense<0.000000e+00> : vector<16xf32>
    %104 = vector.multi_reduction <add>, %103, %cst_44 [1] : vector<16x32xf32> to vector<16xf32>
    %105 = vector.shape_cast %104 : vector<16xf32> to vector<16x1xf32>
    %cst_45 = arith.constant 3.200000e+01 : f32
    %106 = vector.broadcast %cst_45 : f32 to vector<16x1xf32>
    %107 = arith.divf %105, %106 : vector<16x1xf32>
    %cst_46 = arith.constant 9.99999997E-7 : f32
    %108 = vector.broadcast %cst_46 : f32 to vector<16x1xf32>
    %109 = arith.addf %107, %108 : vector<16x1xf32>
    %110 = math.rsqrt %109 : vector<16x1xf32>
    %111 = vector.broadcast %110 : vector<16x1xf32> to vector<16x32xf32>
    %112 = arith.mulf %95, %111 : vector<16x32xf32>
    %113 = vector.broadcast %96 : vector<1x32xf32> to vector<16x32xf32>
    %114 = arith.mulf %112, %113 : vector<16x32xf32>
    %115 = arith.truncf %114 : vector<16x32xf32> to vector<16x32xbf16>
    %cst_47 = arith.constant dense<0.000000e+00> : vector<16x160xf32>
    %116 = tpu.matmul %115, %99, %cst_47 {dimension_numbers = #tpu.dot_dimension_numbers<[1], [0], [0], [1], [0, 0, 1, 1], [], []>} : vector<16x32xbf16>, vector<32x160xbf16>, vector<16x160xf32> -> vector<16x160xf32>
    %117 = vector.extract_strided_slice %116 {offsets = [0, 0], sizes = [16, 64], strides = [1, 1]} : vector<16x160xf32> to vector<16x64xf32>
    %118 = arith.mulf %117, %0 : vector<16x64xf32>
    %119 = vector.extract_strided_slice %116 {offsets = [0, 64], sizes = [16, 64], strides = [1, 1]} : vector<16x160xf32> to vector<16x64xf32>
    %120 = arith.mulf %119, %1 : vector<16x64xf32>
    %121 = arith.addf %118, %120 : vector<16x64xf32>
    %122 = arith.truncf %121 : vector<16x64xf32> to vector<16x64xbf16>
    %123 = vector.extract_strided_slice %116 {offsets = [0, 128], sizes = [16, 32], strides = [1, 1]} : vector<16x160xf32> to vector<16x32xf32>
    %124 = arith.truncf %123 : vector<16x32xf32> to vector<16x32xbf16>
    %125 = vector.extract_strided_slice %122 {offsets = [0, 0], sizes = [16, 16], strides = [1, 1]} : vector<16x64xbf16> to vector<16x16xbf16>
    %126 = vector.extract_strided_slice %122 {offsets = [0, 16], sizes = [16, 16], strides = [1, 1]} : vector<16x64xbf16> to vector<16x16xbf16>
    %127 = tpu.concatenate %125, %126 in 0 : vector<16x16xbf16>, vector<16x16xbf16> -> vector<32x16xbf16>
    %128 = vector.extract_strided_slice %122 {offsets = [0, 32], sizes = [16, 16], strides = [1, 1]} : vector<16x64xbf16> to vector<16x16xbf16>
    %129 = vector.extract_strided_slice %122 {offsets = [0, 48], sizes = [16, 16], strides = [1, 1]} : vector<16x64xbf16> to vector<16x16xbf16>
    %130 = tpu.concatenate %128, %129 in 0 : vector<16x16xbf16>, vector<16x16xbf16> -> vector<32x16xbf16>
    %131 = vector.extract_strided_slice %124 {offsets = [0, 0], sizes = [16, 16], strides = [1, 1]} : vector<16x32xbf16> to vector<16x16xbf16>
    %132 = vector.extract_strided_slice %124 {offsets = [0, 16], sizes = [16, 16], strides = [1, 1]} : vector<16x32xbf16> to vector<16x16xbf16>
    %133 = tpu.concatenate %131, %132 in 0 : vector<16x16xbf16>, vector<16x16xbf16> -> vector<32x16xbf16>
    %cst_48 = arith.constant dense<0.000000e+00> : vector<32x32xf32>
    %134 = tpu.matmul %127, %130, %cst_48 {dimension_numbers = #tpu.dot_dimension_numbers<[1], [1], [0], [0], [0, 0, 1, 0], [], []>} : vector<32x16xbf16>, vector<32x16xbf16>, vector<32x32xf32> -> vector<32x32xf32>
    %135 = arith.addf %134, %5 : vector<32x32xf32>
    %cst_49 = arith.constant dense<0xFF800000> : vector<32xf32>
    %136 = vector.multi_reduction <maximumf>, %135, %cst_49 [1] : vector<32x32xf32> to vector<32xf32>
    %137 = vector.shape_cast %136 : vector<32xf32> to vector<32x1xf32>
    %138 = vector.broadcast %137 : vector<32x1xf32> to vector<32x32xf32>
    %139 = arith.subf %135, %138 : vector<32x32xf32>
    %140 = math.exp %139 : vector<32x32xf32>
    %cst_50 = arith.constant dense<0.000000e+00> : vector<32xf32>
    %141 = vector.multi_reduction <add>, %140, %cst_50 [1] : vector<32x32xf32> to vector<32xf32>
    %142 = vector.shape_cast %141 : vector<32xf32> to vector<32x1xf32>
    %143 = tpu.reciprocal %142 {approx = true} : vector<32x1xf32> -> vector<32x1xf32>
    %144 = vector.broadcast %143 : vector<32x1xf32> to vector<32x32xf32>
    %145 = arith.mulf %140, %144 : vector<32x32xf32>
    %146 = arith.truncf %145 : vector<32x32xf32> to vector<32x32xbf16>
    %cst_51 = arith.constant dense<0.000000e+00> : vector<32x16xf32>
    %147 = tpu.matmul %146, %133, %cst_51 {dimension_numbers = #tpu.dot_dimension_numbers<[1], [0], [0], [1], [0, 0, 1, 1], [], []>} : vector<32x32xbf16>, vector<32x16xbf16>, vector<32x16xf32> -> vector<32x16xf32>
    %148 = vector.extract_strided_slice %147 {offsets = [0, 0], sizes = [16, 16], strides = [1, 1]} : vector<32x16xf32> to vector<16x16xf32>
    %149 = vector.extract_strided_slice %147 {offsets = [16, 0], sizes = [16, 16], strides = [1, 1]} : vector<32x16xf32> to vector<16x16xf32>
    %150 = tpu.concatenate %148, %149 in 1 : vector<16x16xf32>, vector<16x16xf32> -> vector<16x32xf32>
    %151 = arith.truncf %150 : vector<16x32xf32> to vector<16x32xbf16>
    %cst_52 = arith.constant dense<0.000000e+00> : vector<16x32xf32>
    %152 = tpu.matmul %151, %101, %cst_52 {dimension_numbers = #tpu.dot_dimension_numbers<[1], [0], [0], [1], [0, 0, 1, 1], [], []>} : vector<16x32xbf16>, vector<32x32xbf16>, vector<16x32xf32> -> vector<16x32xf32>
    %153 = arith.addf %95, %152 : vector<16x32xf32>
    %154 = arith.mulf %153, %153 : vector<16x32xf32>
    %cst_53 = arith.constant dense<0.000000e+00> : vector<16xf32>
    %155 = vector.multi_reduction <add>, %154, %cst_53 [1] : vector<16x32xf32> to vector<16xf32>
    %156 = vector.shape_cast %155 : vector<16xf32> to vector<16x1xf32>
    %cst_54 = arith.constant 3.200000e+01 : f32
    %157 = vector.broadcast %cst_54 : f32 to vector<16x1xf32>
    %158 = arith.divf %156, %157 : vector<16x1xf32>
    %cst_55 = arith.constant 9.99999997E-7 : f32
    %159 = vector.broadcast %cst_55 : f32 to vector<16x1xf32>
    %160 = arith.addf %158, %159 : vector<16x1xf32>
    %161 = math.rsqrt %160 : vector<16x1xf32>
    %162 = vector.broadcast %161 : vector<16x1xf32> to vector<16x32xf32>
    %163 = arith.mulf %153, %162 : vector<16x32xf32>
    %164 = vector.broadcast %97 : vector<1x32xf32> to vector<16x32xf32>
    %165 = arith.mulf %163, %164 : vector<16x32xf32>
    %166 = arith.truncf %165 : vector<16x32xf32> to vector<16x32xbf16>
    %cst_56 = arith.constant dense<0.000000e+00> : vector<16x128xf32>
    %167 = tpu.matmul %166, %100, %cst_56 {dimension_numbers = #tpu.dot_dimension_numbers<[1], [0], [0], [1], [0, 0, 1, 1], [], []>} : vector<16x32xbf16>, vector<32x128xbf16>, vector<16x128xf32> -> vector<16x128xf32>
    %168 = vector.extract_strided_slice %167 {offsets = [0, 0], sizes = [16, 64], strides = [1, 1]} : vector<16x128xf32> to vector<16x64xf32>
    %169 = vector.extract_strided_slice %167 {offsets = [0, 64], sizes = [16, 64], strides = [1, 1]} : vector<16x128xf32> to vector<16x64xf32>
    %170 = arith.negf %168 : vector<16x64xf32>
    %171 = math.exp %170 : vector<16x64xf32>
    %cst_57 = arith.constant 1.000000e+00 : f32
    %172 = vector.broadcast %cst_57 : f32 to vector<16x64xf32>
    %173 = arith.addf %172, %171 : vector<16x64xf32>
    %174 = arith.divf %172, %173 : vector<16x64xf32>
    %175 = arith.mulf %168, %174 : vector<16x64xf32>
    %176 = arith.mulf %175, %169 : vector<16x64xf32>
    %177 = arith.truncf %176 : vector<16x64xf32> to vector<16x64xbf16>
    %cst_58 = arith.constant dense<0.000000e+00> : vector<16x32xf32>
    %178 = tpu.matmul %177, %102, %cst_58 {dimension_numbers = #tpu.dot_dimension_numbers<[1], [0], [0], [1], [0, 0, 1, 1], [], []>} : vector<16x64xbf16>, vector<64x32xbf16>, vector<16x32xf32> -> vector<16x32xf32>
    %179 = arith.addf %153, %178 : vector<16x32xf32>
    %c68 = arith.constant 68 : index
    %c0_59 = arith.constant 0 : index
    %180 = vector.load %arg1[%c68, %c0_59] : memref<72x128xf32, #tpu.memory_space<vmem>>, vector<1x32xf32>
    %181 = arith.mulf %179, %179 : vector<16x32xf32>
    %cst_60 = arith.constant dense<0.000000e+00> : vector<16xf32>
    %182 = vector.multi_reduction <add>, %181, %cst_60 [1] : vector<16x32xf32> to vector<16xf32>
    %183 = vector.shape_cast %182 : vector<16xf32> to vector<16x1xf32>
    %cst_61 = arith.constant 3.200000e+01 : f32
    %184 = vector.broadcast %cst_61 : f32 to vector<16x1xf32>
    %185 = arith.divf %183, %184 : vector<16x1xf32>
    %cst_62 = arith.constant 9.99999997E-7 : f32
    %186 = vector.broadcast %cst_62 : f32 to vector<16x1xf32>
    %187 = arith.addf %185, %186 : vector<16x1xf32>
    %188 = math.rsqrt %187 : vector<16x1xf32>
    %189 = vector.broadcast %188 : vector<16x1xf32> to vector<16x32xf32>
    %190 = arith.mulf %179, %189 : vector<16x32xf32>
    %191 = vector.broadcast %180 : vector<1x32xf32> to vector<16x32xf32>
    %192 = arith.mulf %190, %191 : vector<16x32xf32>
    %193 = arith.truncf %192 : vector<16x32xf32> to vector<16x32xbf16>
    %cst_63 = arith.constant dense<0.000000e+00> : vector<16x128xf32>
    %194 = tpu.matmul %193, %6, %cst_63 {dimension_numbers = #tpu.dot_dimension_numbers<[1], [0], [0], [1], [0, 0, 1, 1], [], []>} : vector<16x32xbf16>, vector<32x128xbf16>, vector<16x128xf32> -> vector<16x128xf32>
    %c0_64 = arith.constant 0 : index
    %c0_65 = arith.constant 0 : index
    %195 = vector.load %arg4[%c0_64, %c0_65] : memref<16x128xf32, #tpu.memory_space<vmem>>, vector<16x128xf32>
    tpu.vector_store %arg4[%c0_64, %c0_65], %194 {strides = array<i32>} : memref<16x128xf32, #tpu.memory_space<vmem>>, vector<16x128xf32>,
    return
  }
  func.func @transform_0(%arg0: i32) -> (i32, i32) {
    %c0_i32 = arith.constant 0 : i32
    %c0_i32_0 = arith.constant 0 : i32
    %c0_i32_1 = arith.constant 0 : i32
    return %c0_i32, %c0_i32_0 : i32, i32
  }
  func.func @transform_1(%arg0: i32) -> (i32, i32, i32) {
    %c0_i32 = arith.constant 0 : i32
    %c0_i32_0 = arith.constant 0 : i32
    %c0_i32_1 = arith.constant 0 : i32
    %c0_i32_2 = arith.constant 0 : i32
    return %c0_i32, %c0_i32_0, %c0_i32_1 : i32, i32, i32
  }
  func.func @transform_2(%arg0: i32) -> (i32, i32) {
    %c0_i32 = arith.constant 0 : i32
    %c0_i32_0 = arith.constant 0 : i32
    %c0_i32_1 = arith.constant 0 : i32
    return %c0_i32, %c0_i32_0 : i32, i32
  }
  func.func @transform_3(%arg0: i32) -> (i32, i32) {
    %c0_i32 = arith.constant 0 : i32
    %c0_i32_0 = arith.constant 0 : i32
    %c0_i32_1 = arith.constant 0 : i32
    return %c0_i32, %c0_i32_0 : i32, i32
  }
}

</mosaic_0001>

<bundles_post_ra>
// kernel: tpu_custom_call.1
= control target key start
LH: loop header
LB: loop body
LE: loop exit
PB: predicated region body
PF: predicated region fallthrough
CT: control target
= control target key end

     0   :  { %8 = vsyncpa [#allocation3], 0  ;;  %s1980_s0 = inlined_call_operand.hbm [shape: f32[72,128], index: 0, kind: input, shape index: {}]   ;;  %s1981_s1 = inlined_call_operand.hbm [shape: bf16[2,32,160], index: 1, kind: input, shape index: {}]   ;;  %s1982_s2 = inlined_call_operand.hbm [shape: bf16[288,128], index: 2, kind: input, shape index: {}]   ;;  %s1983_s3 = inlined_call_operand.hbm [shape: f32[16,128], index: 3, kind: output, shape index: {}]  }
   0x1   :  { %9 = vsyncpa [#allocation6], 0 }
   0x2   :  { %10 = vsyncpa [#allocation4], 0  ;;  %s1688_s12 = smov [#allocation5]   ;;  %s1689_s14 = smov [#allocation2]  }
   0x3   :  { %s28_s13 = sshll.u32 %s1688_s12, 4  ;;  %s16_s15 = sshll.u32 %s1689_s14, 4  ;;  %s29_s13 = int_to_ptr.vmem [resolvable:$true] %s28_s13  ;;  %s1723_s15 = int_to_ptr.vmem [resolvable:$true] %s16_s15 }
   0x4   :  { %s1594_s18 = scalar_lea.hbm %s1981_s1, 1024 }
   0x5   :  { %p1595_p0 = scmp.ne.s32.totalorder %s1981_s1, %s1594_s18  ;;  %p1598_p1 = scmp.lt.u32.totalorder %s1594_s18, %s1981_s1 }
   0x7   :  { %p1600_p2 = pnand %p1598_p1, %p1595_p0 }
   0x9   :  { %1603 = shalt.err (!%p1600_p2)
}
   0xa   :  { %s1604_s23 = scalar_lea.vmem %s29_s13, 1024  ;;  %p1609_p4 = scmp.lt.s32.totalorder %s29_s13, %s29_s13 }
   0xb   :  { %p1605_p3 = scmp.ne.s32.totalorder %s29_s13, %s1604_s23  ;;  %p1610_p5 = scmp.lt.s32.totalorder %s1604_s23, %s1604_s23 }
   0xd   :  { %p1611_p6 = por %p1610_p5, %p1609_p4 }
   0xf   :  { %p1612_p7 = pnand %p1611_p6, %p1605_p3 }
  0x11   :  { %1615 = shalt.err (!%p1612_p7)
}
  0x12   :  { %s1690_s24 = smov 128   ;;  %s1691_s25 = smov 8  }
  0x13   :  { %34 = dma.hbm_to_vmem [thread:$0]  %s1981_s1, 1024, %s29_s13, [#allocation6], %s1690_s24, %s1690_s24, %s1691_s25  }
  0x14   :  { %s1616_s30 = scalar_lea.hbm %s1980_s0, 1152 }
  0x15   :  { %p1617_p8 = scmp.ne.s32.totalorder %s1980_s0, %s1616_s30  ;;  %p1620_p9 = scmp.lt.u32.totalorder %s1616_s30, %s1980_s0 }
  0x17   :  { %p1622_p10 = pnand %p1620_p9, %p1617_p8 }
  0x19   :  { %1625 = shalt.err (!%p1622_p10)
}
  0x1a   :  { %s1626_s8 = scalar_lea.vmem %s1723_s15, 1152  ;;  %p1631_p12 = scmp.lt.s32.totalorder %s1723_s15, %s1723_s15 }
  0x1b   :  { %p1627_p11 = scmp.ne.s32.totalorder %s1723_s15, %s1626_s8  ;;  %p1632_p13 = scmp.lt.s32.totalorder %s1626_s8, %s1626_s8 }
  0x1d   :  { %p1633_p0 = por %p1632_p13, %p1631_p12 }
  0x1f   :  { %p1634_p1 = pnand %p1633_p0, %p1627_p11 }
  0x21   :  { %1637 = shalt.err (!%p1634_p1)
}
  0x22   :  { %22 = dma.hbm_to_vmem [thread:$0]  %s1980_s0, 1152, %s1723_s15, [#allocation3], %s1690_s24, %s1690_s24, %s1691_s25  }
  0x23   :  { %s1692_s10 = smov [#allocation7]   ;;  %s1638_s14 = scalar_lea.hbm %s1982_s2, 2304 }
  0x24   :  { %s40_s11 = sshll.u32 %s1692_s10, 4  ;;  %p1639_p2 = scmp.ne.s32.totalorder %s1982_s2, %s1638_s14  ;;  %s41_s11 = int_to_ptr.vmem [resolvable:$true] %s40_s11 }
  0x25   :  { %p1642_p3 = scmp.lt.u32.totalorder %s1638_s14, %s1982_s2 }
  0x27   :  { %p1644_p4 = pnand %p1642_p3, %p1639_p2 }
  0x29   :  { %1647 = shalt.err (!%p1644_p4)
}
  0x2a   :  { %s1648_s20 = scalar_lea.vmem %s41_s11, 2304  ;;  %p1653_p6 = scmp.lt.s32.totalorder %s41_s11, %s41_s11 }
  0x2b   :  { %p1649_p5 = scmp.ne.s32.totalorder %s41_s11, %s1648_s20  ;;  %p1654_p7 = scmp.lt.s32.totalorder %s1648_s20, %s1648_s20 }
  0x2d   :  { %p1655_p8 = por %p1654_p7, %p1653_p6 }
  0x2f   :  { %p1656_p9 = pnand %p1655_p8, %p1649_p5 }
  0x31   :  { %1659 = shalt.err (!%p1656_p9)
}
  0x32   :  { %s1693_s0 = smov 64   ;;  %s1694_s15 = smov 4  }
  0x33   :  { %46 = dma.hbm_to_vmem [thread:$0]  %s1982_s2, 2304, %s41_s11, [#allocation6], %s1693_s0, %s1693_s0, %s1694_s15  }
  0x34   :  { %1682 = dma.done.wait [#allocation3], 1152  }
  0x35   :  { %1683 = vsyncadd [#allocation3], 4294966144 }
  0x36   :  { %1684 = dma.done.wait [#allocation6], 3328  }
  0x37   :  { %1685 = vsyncadd [#allocation6], 4294963968  ;;  %v59_v0 = vld [vmem:[#allocation2 + $0x10] sm:$0xff]  ;;  %v60_v1 = vld [vmem:[#allocation2 + $0x18] sm:$0xff]  ;;  %s1695_s23 = smov 32   ;;  %vm115_vm2 = vcmask 261120  }
  0x38   :  { %73 = vrot.lane.b32.xlu0 %v59_v0, %s1695_s23  ;;  %vm69_vm0 = vcmp.ne.f32.partialorder %v59_v0, 0.0  ;;  %vm70_vm1 = vcmp.ne.f32.partialorder %v60_v1, 0.0  ;;  %v1496_v14 = vld [vmem:[#allocation5 + $0x4] ss:$8 sps:$4 sm:$0xff]   ;;  %v1498_v15 = vld [vmem:[#allocation5] ss:$8 sps:$4 sm:$0xff]  }
  0x39   :  { %v1499_v16 = vld [vmem:[#allocation5 + $0x14] ss:$8 sps:$4 sm:$0xff]   ;;  %161 = vmatprep.subr.bf16.mxu0 %v1496_v14  ;;  %v1696_v17 = vmov 0   ;;  %v1501_v18 = vld [vmem:[#allocation5 + $0x10] ss:$8 sps:$4 sm:$0xff]   ;;  %v1792_v35 = vld [vmem:[#allocation2 + $0x8] sm:$0xff] }
  0x3a   :  { %193 = vmatprep.mubr.bf16.mxu0 %v1696_v17  ;;  %162 = vmatpush1.bf16.msra.mxu0 %v1498_v15  ;;  %v1278_v28 = vld [vmem:[#allocation2 + $0x40] ss:$0 sm:$0xff]  ;;  %vm229_vm3 = vcmask 130048   ;;  %s1697_s2 = smov 96   ;;  %s1698_s26 = smov 112   ;;  %v1813_v55 = vld [vmem:[#allocation2 + $0x38] sm:$0xff] }
  0x3b   :  { %163 = vmatprep.subr.bf16.mxu0 %v1499_v16  ;;  %v1790_v33 = vld [vmem:[#allocation2] sm:$0xff]  ;;  %v1815_v56 = vld [vmem:[#allocation2 + $0x28] sm:$0xff]  ;;  %v1818_v59 = vld [vmem:[#allocation2 + $0x30] sm:$0xff]  ;;  %vm1700_vm4 = vmmov 0   ;;  %s1701_s27 = smov 16   ;;  %vm589_vm5 = vcmask 523264  }
  0x3c   :  { %75 = vrot.lane.b32.xlu0 %v60_v1, %s1695_s23  ;;  %v1811_v52 = vld [vmem:[#allocation2 + $0x20] sm:$0xff]  ;;  %s1702_s28 = smov [#allocation8]  }
  0x3d   :  { %s1265_s29 = sshll.u32 %s1702_s28, 4  ;;  %s1266_s29 = int_to_ptr.vmem [resolvable:$true] %s1265_s29 }
  0x3e   :  { %164 = vmatpush1.bf16.msra.mxu0 %v1501_v18  ;;  %s1660_s30 = scalar_lea.vmem %s1266_s29, 256  ;;  %p1665_p11 = scmp.lt.s32.totalorder %s1266_s29, %s1266_s29 }
  0x3f   :  { %p1661_p10 = scmp.ne.s32.totalorder %s1266_s29, %s1660_s30  ;;  %p1666_p12 = scmp.lt.s32.totalorder %s1660_s30, %s1660_s30 }
  0x41   :  { %p1667_p13 = por %p1666_p12, %p1665_p11 }
  0x43   :  { %p1668_p0 = pnand %p1667_p13, %p1661_p10 }
  0xaa   :  { %v74_v2 = vpop.permute.xlu0 %73 }
  0xab   :  { %v79_v3 = vsel %vm69_vm0, %v74_v2, 0.0 }
  0xac   :  { %83 = vrot.lane.b32.xlu1 %v79_v3, %s1693_s0 }
  0xae   :  { %v76_v4 = vpop.permute.xlu0 %75 }
  0xaf   :  { %v80_v5 = vsel %vm70_vm1, %v76_v4, 0.0 }
  0xb0   :  { %85 = vrot.lane.b32.xlu1 %v80_v5, %s1693_s0 }
 0x11e   :  { %v84_v6 = vpop.permute.xlu1 %83 }
 0x11f   :  { %v1776_v7 = vadd.f32 %v84_v6, %v59_v0 }
 0x121   :  { %v113_v8 = vmul.f32 %v1776_v7, %v1776_v7 }
 0x122   :  { %v86_v9 = vpop.permute.xlu1 %85 }
 0x123   :  { %v1780_v10 = vadd.f32 %v86_v9, %v60_v1  ;;  %v116_v11 = vsel %vm115_vm2, %v113_v8, 0.0 }
 0x124   :  { %117 = vadd.xlane.f32.xlu0 %v116_v11 }
 0x125   :  { %v114_v12 = vmul.f32 %v1780_v10, %v1780_v10 }
 0x127   :  { %v119_v13 = vsel %vm115_vm2, %v114_v12, 0.0 }
 0x128   :  { %120 = vadd.xlane.f32.xlu1 %v119_v13 }
 0x1b1   :  { %v118_v19 = vpop.xlane.xlu0 %117 }
 0x1b2   :  { %v123_v20 = vmul.f32 0.03125, %v118_v19 }
 0x1b4   :  { %v125_v21 = vadd.f32 1e-06, %v123_v20 }
 0x1b5   :  { %v121_v22 = vpop.xlane.xlu1 %120 }
 0x1b6   :  { %1526 = vrsqrt.f32 %v125_v21  ;;  %v124_v23 = vmul.f32 0.03125, %v121_v22 }
 0x1b8   :  { %v126_v24 = vadd.f32 1e-06, %v124_v23 }
 0x1ba   :  { %1528 = vrsqrt.f32 %v126_v24 }
 0x1c0   :  { %v1527_v25 = vpop.eup %1526 }
 0x1c1   :  { %v129_v26 = vmul.f32 %v1527_v25, %v1776_v7 }
 0x1c3   :  { %v135_v30 = vmul.f32 %v1278_v28, %v129_v26 }
 0x1c4   :  { %v1529_v27 = vpop.eup %1528 }
 0x1c5   :  { %v130_v29 = vmul.f32 %v1529_v27, %v1780_v10 }
 0x1c7   :  { %v136_v31 = vmul.f32 %v1278_v28, %v130_v29 }
 0x1c9   :  { %v137_v32 = vpack.c.bf16 %v136_v31, %v135_v30 }
 0x1cb   :  { %1283 = vmatmul.mubr.msk.bf16.vlgmr.msra.gmra.mrb[0].mxu0 %vm115_vm2, %v137_v32 }
 0x29e   :  { %v195_v34 = vpop.f32.mrb[0].mxu0 }
 0x29f   :  { %v204_v36 = vmul.f32 %v195_v34, %v1790_v33  ;;  %v197_v37 = vpop.f32.mrb[1].mxu0 }
 0x2a0   :  { %v199_v38 = vpop.f32.mrb[2].mxu0 }
 0x2a1   :  { %v205_v39 = vmul.f32 %v199_v38, %v1792_v35  ;;  %v201_v40 = vpop.f32.mrb[3].mxu0  ;;  %208 = vrot.lane.b32.xlu0 %v204_v36, %s1693_s0 }
 0x2a2   :  { %v1797_v41 = vpack.c.bf16 %v201_v40, %v197_v37 }
 0x2a3   :  { %210 = vrot.lane.b32.xlu1 %v205_v39, %s1693_s0 }
 0x2a4   :  { %1379 = vmatprep.subr.bf16.mxu0 %v1797_v41 }
 0x2a5   :  { %1380 = vmatpush3.bf16.msra.mxu0 %v1797_v41 }
 0x313   :  { %v209_v42 = vpop.permute.xlu0 %208 }
 0x314   :  { %v214_v44 = vadd.f32 %v209_v42, %v204_v36 }
 0x315   :  { %v211_v43 = vpop.permute.xlu1 %210 }
 0x316   :  { %v215_v45 = vadd.f32 %v211_v43, %v205_v39 }
 0x318   :  { %v216_v46 = vpack.c.bf16 %v215_v45, %v214_v44  ;;  %v1502_v44 = vld [vmem:[#allocation7 + $0x30] sm:$0xff]   ;;  %v1699_v45 = vmov 0.0  }
 0x31a   :  { %225 = vrot.lane.b32.xlu1 %v216_v46, %s1697_s2  ;;  %219 = vrot.lane.b32.xlu0 %v216_v46, %s1698_s26 }
 0x31b   :  { %1375 = vmatprep.mubr.msk.bf16.mxu1 %vm229_vm3, %v216_v46  ;;  %v1503_v46 = vld [vmem:[#allocation7 + $0x38] sm:$0xff]  }
 0x38c   :  { %v226_v47 = vpop.permute.xlu1 %225  ;;  %v220_v48 = vpop.permute.xlu0 %219 }
 0x38d   :  { %1467 = vmatprep.subr.msk.bf16.mxu1 %vm229_vm3, %v226_v47  ;;  %227 = vrot.lane.b32.xlu0 %v220_v48, %s1697_s2  ;;  %v237_v49 = vsel %vm229_vm3, %v226_v47, 0 }
 0x38e   :  { %1372 = vmatpush3.bf16.xpose.msra.mxu1 %v237_v49 }
 0x3ff   :  { %v228_v50 = vpop.permute.xlu0 %227 }
 0x400   :  { %1468 = vmatprep.subr.msk.bf16.mxu1 %vm229_vm3, %v228_v50  ;;  %v240_v51 = vsel %vm229_vm3, %v228_v50, 0 }
 0x401   :  { %1374 = vmatpush3.bf16.xpose.msra.mxu1 %v240_v51 }
 0x402   :  { %1395 = vmatprep.subr.bf16.mxu1 %v1699_v45 }
 0x408   :  { %1376 = vmatmul.mubr.msk.bf16.vlgmr.msra.gmra.mrb[0].mxu1 %vm229_vm3, %v220_v48 }
 0x409   :  { %1399 = vmatprep.mubr.msk.bf16.mxu1 %vm1700_vm4, %v1699_v45 }
 0x4db   :  { %v1377_v53 = vpop.f32.mrb[0].mxu1 }
 0x4dc   :  { %v276_v54 = vpop.f32.mrb[1].mxu1  ;;  %v285_v0 = vadd.f32 %v1377_v53, %v1818_v59 }
 0x4dd   :  { %v277_v57 = vadd.f32 %v276_v54, %v1811_v52  ;;  %v1378_v58 = vpop.f32.mrb[2].mxu1 }
 0x4de   :  { %v279_v60 = vpop.f32.mrb[3].mxu1  ;;  %v288_v61 = vadd.f32 %v1378_v58, %v1813_v55  ;;  %v297_v3 = vsel %vm115_vm2, %v285_v0, -inf }
 0x4df   :  { %v280_v62 = vadd.f32 %v279_v60, %v1815_v56  ;;  %v291_v63 = vsel %vm115_vm2, %v277_v57, -inf }
 0x4e0   :  { %292 = vmax.xlane.f32.xlu1 %v291_v63  ;;  %v300_v2 = vsel %vm115_vm2, %v288_v61, -inf }
 0x4e1   :  { %v294_v1 = vsel %vm115_vm2, %v280_v62, -inf }
 0x4e2   :  { %295 = vmax.xlane.f32.xlu0 %v294_v1 }
 0x4e4   :  { %301 = vmax.xlane.f32.xlu1 %v300_v2 }
 0x4e6   :  { %298 = vmax.xlane.f32.xlu0 %v297_v3 }
 0x56d   :  { %v293_v4 = vpop.xlane.xlu1 %292 }
 0x56e   :  { %v303_v9 = vsub.f32 %v277_v57, %v293_v4 }
 0x56f   :  { %v296_v5 = vpop.xlane.xlu0 %295 }
 0x570   :  { %v304_v6 = vsub.f32 %v280_v62, %v296_v5  ;;  %v307_v16 = vmul.f32 1.442695, %v303_v9  ;;  %v1505_v9 = vld [vmem:[#allocation7 + $0x18] sm:$0xff]  }
 0x571   :  { %v302_v8 = vpop.xlane.xlu1 %301 }
 0x572   :  { %v309_v11 = vmul.f32 1.442695, %v304_v6  ;;  %v306_v12 = vsub.f32 %v288_v61, %v302_v8 }
 0x573   :  { %v299_v13 = vpop.xlane.xlu0 %298 }
 0x574   :  { %1530 = vpow2.f32 %v309_v11  ;;  %v313_v14 = vmul.f32 1.442695, %v306_v12  ;;  %v305_v15 = vsub.f32 %v285_v0, %v299_v13 }
 0x576   :  { %1532 = vpow2.f32 %v313_v14  ;;  %v311_v18 = vmul.f32 1.442695, %v305_v15 }
 0x578   :  { %1534 = vpow2.f32 %v311_v18 }
 0x579   :  { %1536 = vpow2.f32 %v307_v16 }
 0x57e   :  { %v1531_v19 = vpop.eup %1530 }
 0x57f   :  { %v318_v20 = vsel %vm115_vm2, %v1531_v19, 0.0 }
 0x580   :  { %v1533_v21 = vpop.eup %1532  ;;  %319 = vadd.xlane.f32.xlu1 %v318_v20  ;;  %v1291_v20 = vld [vmem:[#allocation2 + $0x41] ss:$0 sm:$0xff] }
 0x581   :  { %v324_v24 = vsel %vm115_vm2, %v1533_v21, 0.0 }
 0x582   :  { %v1535_v22 = vpop.eup %1534 }
 0x583   :  { %v321_v23 = vsel %vm115_vm2, %v1535_v22, 0.0  ;;  %v1537_v25 = vpop.eup %1536 }
 0x584   :  { %322 = vadd.xlane.f32.xlu0 %v321_v23  ;;  %325 = vadd.xlane.f32.xlu1 %v324_v24  ;;  %v315_v26 = vsel %vm115_vm2, %v1537_v25, 0.0 }
 0x588   :  { %316 = vadd.xlane.f32.xlu0 %v315_v26  ;;  %v1507_v26 = vld [vmem:[#allocation7 + $0x58] sm:$0xff]  }
 0x59e   :  { %222 = vrot.lane.b32.xlu0 %v1797_v41, %s1698_s26 }
 0x60d   :  { %v320_v27 = vpop.xlane.xlu1 %319 }
 0x611   :  { %v323_v28 = vpop.xlane.xlu0 %322  ;;  %v326_v29 = vpop.xlane.xlu1 %325 }
 0x612   :  { %1538 = vrcp.f32 %v323_v28  ;;  %v1509_v28 = vld [vmem:[#allocation7 + $0x68] sm:$0xff]  }
 0x613   :  { %1540 = vrcp.f32 %v326_v29 }
 0x614   :  { %1542 = vrcp.f32 %v320_v27  ;;  %v1508_v27 = vld [vmem:[#allocation7 + $0x60] sm:$0xff]  }
 0x615   :  { %v317_v30 = vpop.xlane.xlu0 %316 }
 0x616   :  { %1544 = vrcp.f32 %v317_v30 }
 0x619   :  { %v223_v31 = vpop.permute.xlu0 %222 }
 0x61a   :  { %1381 = vmatprep.subr.bf16.mxu0 %v223_v31 }
 0x61b   :  { %1382 = vmatpush3.bf16.msra.mxu0 %v223_v31 }
 0x61c   :  { %v1539_v32 = vpop.eup %1538  ;;  %1387 = vmatprep.subr.bf16.mxu0 %v1699_v45 }
 0x61d   :  { %v1541_v34 = vpop.eup %1540  ;;  %v333_v38 = vmul.f32 %v1539_v32, %v1535_v22 }
 0x61e   :  { %v1543_v36 = vpop.eup %1542  ;;  %v334_v39 = vmul.f32 %v1541_v34, %v1533_v21 }
 0x61f   :  { %v332_v42 = vmul.f32 %v1543_v36, %v1531_v19 }
 0x620   :  { %v1545_v37 = vpop.eup %1544  ;;  %v336_v43 = vpack.c.bf16 %v334_v39, %v333_v38 }
 0x621   :  { %v331_v40 = vmul.f32 %v1545_v37, %v1537_v25  ;;  %v1506_v25 = vld [vmem:[#allocation7 + $0x50] sm:$0xff]  }
 0x623   :  { %v335_v41 = vpack.c.bf16 %v332_v42, %v331_v40 }
 0x625   :  { %1383 = vmatprep.mubr.msk.bf16.mxu0 %vm115_vm2, %v335_v41 }
 0x626   :  { %1384 = vmatmul.mubr.msk.bf16.vlgmr.msra.gmra.mrb[4].mxu0 %vm115_vm2, %v336_v43 }
 0x627   :  { %1388 = vmatpush3.bf16.msra.mxu0 %v1502_v44  ;;  %1391 = vmatprep.mubr.msk.bf16.mxu0 %vm1700_vm4, %v1699_v45 }
 0x628   :  { %1389 = vmatprep.subr.bf16.mxu0 %v1699_v45 }
 0x62b   :  { %1390 = vmatpush3.bf16.msra.mxu0 %v1503_v46 }
 0x62c   :  { %1403 = vmatprep.subr.bf16.mxu0 %v1699_v45 }
 0x6f9   :  { %v1385_v47 = vpop.f32.mrb[4].mxu0 }
 0x6fa   :  { %v377_v48 = vpop.f32.mrb[5].mxu0 }
 0x6fb   :  { %v1386_v49 = vpop.f32.mrb[6].mxu0 }
 0x6fc   :  { %v1486_v50 = vpack.i.bf16 %v1386_v49, %v1385_v47  ;;  %v380_v51 = vpop.f32.mrb[7].mxu0 }
 0x6fe   :  { %1487 = vrot.lane.b32.xlu1 %v1486_v50, %s1701_s27 }
 0x770   :  { %v1488_v53 = vpop.permute.xlu1 %1487 }
 0x771   :  { %v1490_v54 = vunpack.i.h.bf16 %v1488_v53  ;;  %v1489_v57 = vunpack.i.l.bf16 %v1488_v53 }
 0x773   :  { %v400_v58 = vsel %vm229_vm3, %v377_v48, %v1489_v57  ;;  %v401_v60 = vsel %vm229_vm3, %v380_v51, %v1490_v54 }
 0x774   :  { %v402_v61 = vpack.c.bf16 %v401_v60, %v400_v58 }
 0x776   :  { %1392 = vmatmul.mubr.msk.bf16.vlgmr.msra.gmra.mrb[8].mxu0 %vm115_vm2, %v402_v61 }
 0x777   :  { %1411 = vmatprep.mubr.msk.bf16.mxu0 %vm1700_vm4, %v1699_v45  ;;  %1404 = vmatpush3.bf16.msra.mxu0 %v1506_v25 }
 0x778   :  { %1405 = vmatprep.subr.bf16.mxu0 %v1699_v45 }
 0x77b   :  { %1406 = vmatpush3.bf16.msra.mxu0 %v1507_v26 }
 0x77c   :  { %1407 = vmatprep.subr.bf16.mxu0 %v1699_v45 }
 0x77f   :  { %1408 = vmatpush3.bf16.msra.mxu0 %v1508_v27 }
 0x780   :  { %1409 = vmatprep.subr.bf16.mxu0 %v1699_v45 }
 0x783   :  { %1410 = vmatpush3.bf16.msra.mxu0 %v1509_v28 }
 0x849   :  { %v452_v62 = vpop.f32.mrb[8].mxu0 }
 0x84a   :  { %v1850_v63 = vadd.f32 %v452_v62, %v1776_v7  ;;  %v1393_v0 = vpop.f32.mrb[9].mxu0  ;;  %v1504_v7 = vld [vmem:[#allocation7 + $0x10] sm:$0xff]  }
 0x84b   :  { %v455_v1 = vpop.f32.mrb[10].mxu0  ;;  %1396 = vmatpush3.bf16.msra.mxu1 %v1504_v7 }
 0x84c   :  { %v1853_v2 = vadd.f32 %v455_v1, %v1780_v10  ;;  %v1394_v3 = vpop.f32.mrb[11].mxu0  ;;  %v461_v4 = vmul.f32 %v1850_v63, %v1850_v63  ;;  %1397 = vmatprep.subr.bf16.mxu1 %v1699_v45  ;;  %v1510_v1 = vld [vmem:[#allocation5 + $0x20] ss:$8 sps:$4 sm:$0xff]  }
 0x84d   :  { %v1513_v3 = vld [vmem:[#allocation5 + $0x30] ss:$8 sps:$4 sm:$0xff]  }
 0x84e   :  { %v463_v5 = vsel %vm115_vm2, %v461_v4, 0.0  ;;  %v462_v6 = vmul.f32 %v1853_v2, %v1853_v2 }
 0x84f   :  { %464 = vadd.xlane.f32.xlu1 %v463_v5  ;;  %1398 = vmatpush3.bf16.msra.mxu1 %v1505_v9 }
 0x850   :  { %v466_v8 = vsel %vm115_vm2, %v462_v6, 0.0 }
 0x851   :  { %467 = vadd.xlane.f32.xlu0 %v466_v8 }
 0x8dc   :  { %v465_v10 = vpop.xlane.xlu1 %464 }
 0x8dd   :  { %v469_v11 = vmul.f32 0.03125, %v465_v10 }
 0x8de   :  { %v468_v12 = vpop.xlane.xlu0 %467 }
 0x8df   :  { %v471_v13 = vadd.f32 1e-06, %v469_v11  ;;  %v470_v14 = vmul.f32 0.03125, %v468_v12 }
 0x8e1   :  { %1546 = vrsqrt.f32 %v471_v13  ;;  %v472_v15 = vadd.f32 1e-06, %v470_v14  ;;  %v1302_v13 = vld [vmem:[#allocation2 + $0x42] ss:$0 sm:$0xff] }
 0x8e3   :  { %1548 = vrsqrt.f32 %v472_v15 }
 0x8eb   :  { %v1547_v16 = vpop.eup %1546 }
 0x8ec   :  { %v475_v18 = vmul.f32 %v1547_v16, %v1850_v63 }
 0x8ed   :  { %v1549_v19 = vpop.eup %1548 }
 0x8ee   :  { %v476_v21 = vmul.f32 %v1549_v19, %v1853_v2  ;;  %v481_v22 = vmul.f32 %v1291_v20, %v475_v18 }
 0x8f0   :  { %v482_v23 = vmul.f32 %v1291_v20, %v476_v21 }
 0x8f2   :  { %v483_v24 = vpack.c.bf16 %v482_v23, %v481_v22 }
 0x8f4   :  { %1400 = vmatmul.mubr.msk.bf16.vlgmr.msra.gmra.mrb[4].mxu1 %vm115_vm2, %v483_v24 }
 0x8f5   :  { %737 = vmatprep.mubr.bf16.mxu1 %v1696_v17 }
 0x9c7   :  { %v533_v29 = vpop.f32.mrb[4].mxu1 }
 0x9c8   :  { %556 = vrot.lane.b32.xlu0 %v533_v29, %s1693_s0  ;;  %v1401_v30 = vpop.f32.mrb[5].mxu1  ;;  %v1295_v32 = vmul.f32 -1.442695, %v533_v29 }
 0x9c9   :  { %v536_v31 = vpop.f32.mrb[6].mxu1 }
 0x9ca   :  { %558 = vrot.lane.b32.xlu1 %v536_v31, %s1693_s0  ;;  %v1402_v17 = vpop.f32.mrb[7].mxu1  ;;  %v1296_v34 = vmul.f32 -1.442695, %v536_v31  ;;  %1550 = vpow2.f32 %v1295_v32 }
 0x9cc   :  { %1552 = vpow2.f32 %v1296_v34 }
 0x9d4   :  { %v1551_v36 = vpop.eup %1550 }
 0x9d5   :  { %v546_v38 = vadd.f32 1.0, %v1551_v36 }
 0x9d6   :  { %v1553_v37 = vpop.eup %1552 }
 0x9d7   :  { %v547_v39 = vadd.f32 1.0, %v1553_v37  ;;  %1554 = vrcp.f32 %v546_v38 }
 0x9d9   :  { %1556 = vrcp.f32 %v547_v39 }
 0x9e1   :  { %v1555_v40 = vpop.eup %1554 }
 0x9e2   :  { %v552_v43 = vmul.f32 %v1555_v40, %v533_v29 }
 0x9e3   :  { %v1557_v42 = vpop.eup %1556 }
 0x9e4   :  { %v553_v44 = vmul.f32 %v1557_v42, %v536_v31 }
 0xa3a   :  { %v557_v41 = vpop.permute.xlu0 %556 }
 0xa3b   :  { %v562_v47 = vmul.f32 %v557_v41, %v552_v43 }
 0xa3c   :  { %v559_v46 = vpop.permute.xlu1 %558 }
 0xa3d   :  { %v563_v48 = vmul.f32 %v559_v46, %v553_v44 }
 0xa3f   :  { %v564_v49 = vpack.c.bf16 %v563_v48, %v562_v47 }
 0xa41   :  { %1412 = vmatmul.mubr.msk.bf16.vlgmr.msra.gmra.mrb[12].mxu0 %vm589_vm5, %v564_v49 }
 0xb14   :  { %v627_v50 = vpop.f32.mrb[12].mxu0 }
 0xb15   :  { %v1873_v51 = vadd.f32 %v627_v50, %v1850_v63  ;;  %v1413_v53 = vpop.f32.mrb[13].mxu0  ;;  %v1512_v63 = vld [vmem:[#allocation5 + $0x24] ss:$8 sps:$4 sm:$0xff]  }
 0xb16   :  { %v630_v54 = vpop.f32.mrb[14].mxu0  ;;  %705 = vmatprep.subr.bf16.mxu1 %v1512_v63 }
 0xb17   :  { %v1876_v57 = vadd.f32 %v630_v54, %v1853_v2  ;;  %v1414_v58 = vpop.f32.mrb[15].mxu0  ;;  %v659_v60 = vmul.f32 %v1873_v51, %v1873_v51  ;;  %706 = vmatpush1.bf16.msra.mxu1 %v1510_v1  ;;  %v1515_v2 = vld [vmem:[#allocation5 + $0x34] ss:$8 sps:$4 sm:$0xff]  }
 0xb18   :  { %707 = vmatprep.subr.bf16.mxu1 %v1515_v2 }
 0xb19   :  { %v661_v61 = vsel %vm115_vm2, %v659_v60, 0.0  ;;  %v660_v62 = vmul.f32 %v1876_v57, %v1876_v57 }
 0xb1a   :  { %662 = vadd.xlane.f32.xlu1 %v661_v61 }
 0xb1b   :  { %v664_v0 = vsel %vm115_vm2, %v660_v62, 0.0  ;;  %708 = vmatpush1.bf16.msra.mxu1 %v1513_v3 }
 0xb1c   :  { %665 = vadd.xlane.f32.xlu0 %v664_v0 }
 0xba7   :  { %v663_v4 = vpop.xlane.xlu1 %662 }
 0xba8   :  { %v667_v5 = vmul.f32 0.03125, %v663_v4 }
 0xba9   :  { %v666_v6 = vpop.xlane.xlu0 %665 }
 0xbaa   :  { %v669_v8 = vadd.f32 1e-06, %v667_v5  ;;  %v668_v7 = vmul.f32 0.03125, %v666_v6 }
 0xbac   :  { %1558 = vrsqrt.f32 %v669_v8  ;;  %v670_v9 = vadd.f32 1e-06, %v668_v7 }
 0xbae   :  { %1560 = vrsqrt.f32 %v670_v9 }
 0xbb6   :  { %v1559_v10 = vpop.eup %1558 }
 0xbb7   :  { %v673_v11 = vmul.f32 %v1559_v10, %v1873_v51 }
 0xbb8   :  { %v1561_v12 = vpop.eup %1560 }
 0xbb9   :  { %v674_v14 = vmul.f32 %v1561_v12, %v1876_v57  ;;  %v679_v15 = vmul.f32 %v1302_v13, %v673_v11 }
 0xbbb   :  { %v680_v16 = vmul.f32 %v1302_v13, %v674_v14 }
 0xbbd   :  { %v681_v18 = vpack.c.bf16 %v680_v16, %v679_v15 }
 0xbbf   :  { %1307 = vmatmul.mubr.msk.bf16.vlgmr.msra.gmra.mrb[8].mxu1 %vm115_vm2, %v681_v18 }
 0xc92   :  { %v739_v19 = vpop.f32.mrb[8].mxu1 }
 0xc93   :  { %v748_v20 = vmul.f32 %v739_v19, %v1790_v33  ;;  %v741_v21 = vpop.f32.mrb[9].mxu1 }
 0xc94   :  { %v743_v22 = vpop.f32.mrb[10].mxu1 }
 0xc95   :  { %v749_v23 = vmul.f32 %v743_v22, %v1792_v35  ;;  %752 = vrot.lane.b32.xlu0 %v748_v20, %s1693_s0  ;;  %v745_v24 = vpop.f32.mrb[11].mxu1  ;;  %v1516_v22 = vld [vmem:[#allocation7 + $0x40] sm:$0xff]  }
 0xc96   :  { %v1890_v25 = vpack.c.bf16 %v745_v24, %v741_v21 }
 0xc97   :  { %754 = vrot.lane.b32.xlu1 %v749_v23, %s1693_s0 }
 0xc98   :  { %1423 = vmatprep.subr.bf16.mxu0 %v1890_v25 }
 0xc99   :  { %1424 = vmatpush3.bf16.msra.mxu0 %v1890_v25 }
 0xd07   :  { %v753_v26 = vpop.permute.xlu0 %752 }
 0xd08   :  { %v758_v28 = vadd.f32 %v753_v26, %v748_v20 }
 0xd09   :  { %v755_v27 = vpop.permute.xlu1 %754 }
 0xd0a   :  { %v759_v29 = vadd.f32 %v755_v27, %v749_v23  ;;  %v1517_v23 = vld [vmem:[#allocation7 + $0x48] sm:$0xff]  }
 0xd0c   :  { %v760_v33 = vpack.c.bf16 %v759_v29, %v758_v28 }
 0xd0e   :  { %769 = vrot.lane.b32.xlu0 %v760_v33, %s1697_s2  ;;  %763 = vrot.lane.b32.xlu1 %v760_v33, %s1698_s26 }
 0xd0f   :  { %1419 = vmatprep.mubr.msk.bf16.mxu1 %vm229_vm3, %v760_v33 }
 0xd80   :  { %v770_v35 = vpop.permute.xlu0 %769  ;;  %v764_v30 = vpop.permute.xlu1 %763 }
 0xd81   :  { %v780_v31 = vsel %vm229_vm3, %v770_v35, 0  ;;  %1469 = vmatprep.subr.msk.bf16.mxu1 %vm229_vm3, %v770_v35  ;;  %771 = vrot.lane.b32.xlu1 %v764_v30, %s1697_s2 }
 0xd82   :  { %1416 = vmatpush3.bf16.xpose.msra.mxu1 %v780_v31 }
 0xdf3   :  { %v772_v17 = vpop.permute.xlu1 %771 }
 0xdf4   :  { %v783_v32 = vsel %vm229_vm3, %v772_v17, 0  ;;  %1470 = vmatprep.subr.msk.bf16.mxu1 %vm229_vm3, %v772_v17 }
 0xdf5   :  { %1418 = vmatpush3.bf16.xpose.msra.mxu1 %v783_v32 }
 0xdf6   :  { %1439 = vmatprep.subr.bf16.mxu1 %v1699_v45 }
 0xdfc   :  { %1420 = vmatmul.mubr.msk.bf16.vlgmr.msra.gmra.mrb[12].mxu1 %vm229_vm3, %v764_v30 }
 0xdfd   :  { %1443 = vmatprep.mubr.msk.bf16.mxu1 %vm1700_vm4, %v1699_v45 }
 0xecf   :  { %v1421_v34 = vpop.f32.mrb[12].mxu1 }
 0xed0   :  { %v819_v36 = vpop.f32.mrb[13].mxu1  ;;  %v828_v40 = vadd.f32 %v1421_v34, %v1818_v59 }
 0xed1   :  { %v820_v37 = vadd.f32 %v819_v36, %v1811_v52  ;;  %v1422_v38 = vpop.f32.mrb[14].mxu1 }
 0xed2   :  { %v822_v39 = vpop.f32.mrb[15].mxu1  ;;  %v831_v44 = vadd.f32 %v1422_v38, %v1813_v55  ;;  %v840_v46 = vsel %vm115_vm2, %v828_v40, -inf }
 0xed3   :  { %v823_v42 = vadd.f32 %v822_v39, %v1815_v56  ;;  %v834_v41 = vsel %vm115_vm2, %v820_v37, -inf }
 0xed4   :  { %835 = vmax.xlane.f32.xlu0 %v834_v41  ;;  %v843_v47 = vsel %vm115_vm2, %v831_v44, -inf }
 0xed5   :  { %v837_v43 = vsel %vm115_vm2, %v823_v42, -inf }
 0xed6   :  { %838 = vmax.xlane.f32.xlu1 %v837_v43 }
 0xed8   :  { %841 = vmax.xlane.f32.xlu0 %v840_v46 }
 0xedc   :  { %844 = vmax.xlane.f32.xlu0 %v843_v47 }
 0xf61   :  { %v836_v52 = vpop.xlane.xlu0 %835 }
 0xf62   :  { %v846_v49 = vsub.f32 %v820_v37, %v836_v52 }
 0xf63   :  { %v839_v48 = vpop.xlane.xlu1 %838 }
 0xf64   :  { %v847_v59 = vsub.f32 %v823_v42, %v839_v48  ;;  %v850_v54 = vmul.f32 1.442695, %v846_v49 }
 0xf65   :  { %v842_v50 = vpop.xlane.xlu0 %841 }
 0xf66   :  { %v852_v56 = vmul.f32 1.442695, %v847_v59  ;;  %v848_v53 = vsub.f32 %v828_v40, %v842_v50 }
 0xf68   :  { %1562 = vpow2.f32 %v852_v56  ;;  %v854_v58 = vmul.f32 1.442695, %v848_v53  ;;  %v1315_v53 = vld [vmem:[#allocation2 + $0x43] ss:$0 sm:$0xff] }
 0xf69   :  { %v845_v60 = vpop.xlane.xlu0 %844 }
 0xf6a   :  { %1564 = vpow2.f32 %v854_v58  ;;  %v849_v61 = vsub.f32 %v831_v44, %v845_v60  ;;  %v1519_v44 = vld [vmem:[#allocation7 + $0x28] sm:$0xff]  }
 0xf6b   :  { %1566 = vpow2.f32 %v850_v54 }
 0xf6c   :  { %v856_v55 = vmul.f32 1.442695, %v849_v61 }
 0xf6e   :  { %1568 = vpow2.f32 %v856_v55  ;;  %v1520_v55 = vld [vmem:[#allocation7 + $0x70] sm:$0xff]  }
 0xf72   :  { %v1563_v62 = vpop.eup %1562 }
 0xf73   :  { %v861_v0 = vsel %vm115_vm2, %v1563_v62, 0.0 }
 0xf74   :  { %v1565_v63 = vpop.eup %1564  ;;  %862 = vadd.xlane.f32.xlu0 %v861_v0  ;;  %v1522_v0 = vld [vmem:[#allocation7 + $0x80] sm:$0xff]  }
 0xf75   :  { %v864_v1 = vsel %vm115_vm2, %v1565_v63, 0.0  ;;  %v1567_v3 = vpop.eup %1566 }
 0xf76   :  { %865 = vadd.xlane.f32.xlu1 %v864_v1  ;;  %v858_v4 = vsel %vm115_vm2, %v1567_v3, 0.0 }
 0xf78   :  { %v1569_v2 = vpop.eup %1568 }
 0xf79   :  { %v867_v5 = vsel %vm115_vm2, %v1569_v2, 0.0 }
 0xf7a   :  { %859 = vadd.xlane.f32.xlu1 %v858_v4  ;;  %868 = vadd.xlane.f32.xlu0 %v867_v5 }
 0xf8b   :  { %766 = vrot.lane.b32.xlu1 %v1890_v25, %s1698_s26 }
0x1001   :  { %v863_v6 = vpop.xlane.xlu0 %862 }
0x1002   :  { %1570 = vrcp.f32 %v863_v6 }
0x1003   :  { %v866_v8 = vpop.xlane.xlu1 %865 }
0x1004   :  { %1572 = vrcp.f32 %v866_v8 }
0x1007   :  { %v860_v7 = vpop.xlane.xlu1 %859  ;;  %v869_v9 = vpop.xlane.xlu0 %868 }
0x1008   :  { %1574 = vrcp.f32 %v860_v7 }
0x1009   :  { %1576 = vrcp.f32 %v869_v9 }
0x100b   :  { %v767_v10 = vpop.permute.xlu1 %766 }
0x100c   :  { %1425 = vmatprep.subr.bf16.mxu0 %v767_v10  ;;  %v1571_v11 = vpop.eup %1570 }
0x100d   :  { %1426 = vmatpush3.bf16.msra.mxu0 %v767_v10  ;;  %v875_v16 = vmul.f32 %v1571_v11, %v1563_v62  ;;  %v1521_v62 = vld [vmem:[#allocation7 + $0x78] sm:$0xff]  }
0x100e   :  { %1431 = vmatprep.subr.bf16.mxu0 %v1699_v45  ;;  %v1573_v12 = vpop.eup %1572 }
0x100f   :  { %v876_v18 = vmul.f32 %v1573_v12, %v1565_v63  ;;  %v1523_v63 = vld [vmem:[#allocation7 + $0x88] sm:$0xff]  }
0x1012   :  { %v1575_v13 = vpop.eup %1574 }
0x1013   :  { %v1577_v14 = vpop.eup %1576  ;;  %v874_v15 = vmul.f32 %v1575_v13, %v1567_v3 }
0x1014   :  { %v877_v19 = vmul.f32 %v1577_v14, %v1569_v2 }
0x1015   :  { %v878_v20 = vpack.c.bf16 %v875_v16, %v874_v15 }
0x1016   :  { %v879_v21 = vpack.c.bf16 %v877_v19, %v876_v18 }
0x1017   :  { %1427 = vmatprep.mubr.msk.bf16.mxu0 %vm115_vm2, %v878_v20 }
0x1018   :  { %1428 = vmatmul.mubr.msk.bf16.vlgmr.msra.gmra.mrb[16].mxu0 %vm115_vm2, %v879_v21 }
0x1019   :  { %1435 = vmatprep.mubr.msk.bf16.mxu0 %vm1700_vm4, %v1699_v45  ;;  %1432 = vmatpush3.bf16.msra.mxu0 %v1516_v22 }
0x101a   :  { %1433 = vmatprep.subr.bf16.mxu0 %v1699_v45 }
0x101d   :  { %1434 = vmatpush3.bf16.msra.mxu0 %v1517_v23 }
0x101e   :  { %1447 = vmatprep.subr.bf16.mxu0 %v1699_v45 }
0x10eb   :  { %v1429_v24 = vpop.f32.mrb[16].mxu0 }
0x10ec   :  { %v920_v25 = vpop.f32.mrb[17].mxu0 }
0x10ed   :  { %v1430_v26 = vpop.f32.mrb[18].mxu0 }
0x10ee   :  { %v1491_v27 = vpack.i.bf16 %v1430_v26, %v1429_v24  ;;  %v923_v28 = vpop.f32.mrb[19].mxu0 }
0x10f0   :  { %1492 = vrot.lane.b32.xlu0 %v1491_v27, %s1701_s27 }
0x1162   :  { %v1493_v29 = vpop.permute.xlu0 %1492 }
0x1163   :  { %v1495_v33 = vunpack.i.h.bf16 %v1493_v29  ;;  %v1494_v35 = vunpack.i.l.bf16 %v1493_v29 }
0x1165   :  { %v943_v30 = vsel %vm229_vm3, %v920_v25, %v1494_v35  ;;  %v944_v31 = vsel %vm229_vm3, %v923_v28, %v1495_v33  ;;  %v1524_v35 = vld [vmem:[#allocation7] sm:$0xff]  }
0x1166   :  { %v945_v17 = vpack.c.bf16 %v944_v31, %v943_v30  ;;  %v1525_v30 = vld [vmem:[#allocation7 + $0x8] sm:$0xff]  }
0x1168   :  { %1436 = vmatmul.mubr.msk.bf16.vlgmr.msra.gmra.mrb[20].mxu0 %vm115_vm2, %v945_v17 }
0x1169   :  { %1455 = vmatprep.mubr.msk.bf16.mxu0 %vm1700_vm4, %v1699_v45  ;;  %1448 = vmatpush3.bf16.msra.mxu0 %v1520_v55 }
0x116a   :  { %1449 = vmatprep.subr.bf16.mxu0 %v1699_v45 }
0x116d   :  { %1450 = vmatpush3.bf16.msra.mxu0 %v1521_v62 }
0x116e   :  { %1451 = vmatprep.subr.bf16.mxu0 %v1699_v45 }
0x1171   :  { %1452 = vmatpush3.bf16.msra.mxu0 %v1522_v0 }
0x1172   :  { %1453 = vmatprep.subr.bf16.mxu0 %v1699_v45 }
0x1175   :  { %1454 = vmatpush3.bf16.msra.mxu0 %v1523_v63 }
0x123b   :  { %v995_v32 = vpop.f32.mrb[20].mxu0 }
0x123c   :  { %v1935_v34 = vadd.f32 %v995_v32, %v1873_v51  ;;  %v1437_v36 = vpop.f32.mrb[21].mxu0  ;;  %v1518_v51 = vld [vmem:[#allocation7 + $0x20] sm:$0xff]  }
0x123d   :  { %v998_v37 = vpop.f32.mrb[22].mxu0  ;;  %1440 = vmatpush3.bf16.msra.mxu1 %v1518_v51 }
0x123e   :  { %v1938_v38 = vadd.f32 %v998_v37, %v1876_v57  ;;  %v1438_v39 = vpop.f32.mrb[23].mxu0  ;;  %v1004_v40 = vmul.f32 %v1935_v34, %v1935_v34  ;;  %1441 = vmatprep.subr.bf16.mxu1 %v1699_v45 }
0x1240   :  { %v1006_v42 = vsel %vm115_vm2, %v1004_v40, 0.0  ;;  %v1005_v41 = vmul.f32 %v1938_v38, %v1938_v38 }
0x1241   :  { %1007 = vadd.xlane.f32.xlu1 %v1006_v42  ;;  %1442 = vmatpush3.bf16.msra.mxu1 %v1519_v44  ;;  %v1326_v42 = vld [vmem:[#allocation2 + $0x44] ss:$0 sm:$0xff] }
0x1242   :  { %v1009_v43 = vsel %vm115_vm2, %v1005_v41, 0.0  ;;  %1459 = vmatprep.subr.bf16.mxu1 %v1699_v45 }
0x1243   :  { %1010 = vadd.xlane.f32.xlu0 %v1009_v43 }
0x12ce   :  { %v1008_v57 = vpop.xlane.xlu1 %1007 }
0x12cf   :  { %v1012_v46 = vmul.f32 0.03125, %v1008_v57 }
0x12d0   :  { %v1011_v47 = vpop.xlane.xlu0 %1010 }
0x12d1   :  { %v1014_v52 = vadd.f32 1e-06, %v1012_v46  ;;  %v1013_v48 = vmul.f32 0.03125, %v1011_v47 }
0x12d3   :  { %1578 = vrsqrt.f32 %v1014_v52  ;;  %v1015_v49 = vadd.f32 1e-06, %v1013_v48 }
0x12d5   :  { %1580 = vrsqrt.f32 %v1015_v49 }
0x12dd   :  { %v1579_v59 = vpop.eup %1578 }
0x12de   :  { %v1018_v50 = vmul.f32 %v1579_v59, %v1935_v34 }
0x12df   :  { %v1581_v56 = vpop.eup %1580 }
0x12e0   :  { %v1019_v54 = vmul.f32 %v1581_v56, %v1938_v38  ;;  %v1024_v58 = vmul.f32 %v1315_v53, %v1018_v50 }
0x12e2   :  { %v1025_v60 = vmul.f32 %v1315_v53, %v1019_v54 }
0x12e4   :  { %v1026_v61 = vpack.c.bf16 %v1025_v60, %v1024_v58 }
0x12e6   :  { %1444 = vmatmul.mubr.msk.bf16.vlgmr.msra.gmra.mrb[16].mxu1 %vm115_vm2, %v1026_v61 }
0x12e7   :  { %1463 = vmatprep.mubr.msk.bf16.mxu1 %vm1700_vm4, %v1699_v45  ;;  %1460 = vmatpush3.bf16.msra.mxu1 %v1524_v35 }
0x12e8   :  { %1461 = vmatprep.subr.bf16.mxu1 %v1699_v45 }
0x12eb   :  { %1462 = vmatpush3.bf16.msra.mxu1 %v1525_v30 }
0x13b9   :  { %v1076_v1 = vpop.f32.mrb[16].mxu1 }
0x13ba   :  { %1099 = vrot.lane.b32.xlu1 %v1076_v1, %s1693_s0  ;;  %v1445_v3 = vpop.f32.mrb[17].mxu1  ;;  %v1319_v5 = vmul.f32 -1.442695, %v1076_v1 }
0x13bb   :  { %v1079_v2 = vpop.f32.mrb[18].mxu1 }
0x13bc   :  { %1101 = vrot.lane.b32.xlu0 %v1079_v2, %s1693_s0  ;;  %v1446_v4 = vpop.f32.mrb[19].mxu1  ;;  %v1320_v6 = vmul.f32 -1.442695, %v1079_v2  ;;  %1582 = vpow2.f32 %v1319_v5 }
0x13be   :  { %1584 = vpow2.f32 %v1320_v6 }
0x13c6   :  { %v1583_v8 = vpop.eup %1582 }
0x13c7   :  { %v1089_v9 = vadd.f32 1.0, %v1583_v8 }
0x13c8   :  { %v1585_v7 = vpop.eup %1584 }
0x13c9   :  { %v1090_v10 = vadd.f32 1.0, %v1585_v7  ;;  %1586 = vrcp.f32 %v1089_v9 }
0x13cb   :  { %1588 = vrcp.f32 %v1090_v10 }
0x13d3   :  { %v1587_v11 = vpop.eup %1586 }
0x13d4   :  { %v1095_v14 = vmul.f32 %v1587_v11, %v1076_v1 }
0x13d5   :  { %v1589_v12 = vpop.eup %1588 }
0x13d6   :  { %v1096_v15 = vmul.f32 %v1589_v12, %v1079_v2 }
0x142c   :  { %v1100_v13 = vpop.permute.xlu1 %1099 }
0x142d   :  { %v1105_v18 = vmul.f32 %v1100_v13, %v1095_v14 }
0x142e   :  { %v1102_v16 = vpop.permute.xlu0 %1101 }
0x142f   :  { %v1106_v19 = vmul.f32 %v1102_v16, %v1096_v15 }
0x1431   :  { %v1107_v20 = vpack.c.bf16 %v1106_v19, %v1105_v18 }
0x1433   :  { %1456 = vmatmul.mubr.msk.bf16.vlgmr.msra.gmra.mrb[24].mxu0 %vm589_vm5, %v1107_v20 }
0x1506   :  { %v1169_v21 = vpop.f32.mrb[24].mxu0 }
0x1507   :  { %v1176_v22 = vadd.f32 %v1169_v21, %v1935_v34  ;;  %v1457_v23 = vpop.f32.mrb[25].mxu0 }
0x1508   :  { %v1172_v24 = vpop.f32.mrb[26].mxu0 }
0x1509   :  { %v1177_v25 = vadd.f32 %v1172_v24, %v1938_v38  ;;  %v1458_v26 = vpop.f32.mrb[27].mxu0  ;;  %v1179_v27 = vmul.f32 %v1176_v22, %v1176_v22 }
0x150b   :  { %v1181_v28 = vsel %vm115_vm2, %v1179_v27, 0.0  ;;  %v1180_v29 = vmul.f32 %v1177_v25, %v1177_v25 }
0x150c   :  { %1182 = vadd.xlane.f32.xlu1 %v1181_v28 }
0x150d   :  { %v1184_v33 = vsel %vm115_vm2, %v1180_v29, 0.0 }
0x150e   :  { %1185 = vadd.xlane.f32.xlu0 %v1184_v33 }
0x1599   :  { %v1183_v31 = vpop.xlane.xlu1 %1182 }
0x159a   :  { %v1187_v17 = vmul.f32 0.03125, %v1183_v31 }
0x159b   :  { %v1186_v32 = vpop.xlane.xlu0 %1185 }
0x159c   :  { %v1189_v34 = vadd.f32 1e-06, %v1187_v17  ;;  %v1188_v36 = vmul.f32 0.03125, %v1186_v32 }
0x159e   :  { %1590 = vrsqrt.f32 %v1189_v34  ;;  %v1190_v37 = vadd.f32 1e-06, %v1188_v36 }
0x15a0   :  { %1592 = vrsqrt.f32 %v1190_v37 }
0x15a8   :  { %v1591_v38 = vpop.eup %1590 }
0x15a9   :  { %v1193_v39 = vmul.f32 %v1591_v38, %v1176_v22 }
0x15aa   :  { %v1593_v40 = vpop.eup %1592 }
0x15ab   :  { %v1194_v41 = vmul.f32 %v1593_v40, %v1177_v25  ;;  %v1199_v43 = vmul.f32 %v1326_v42, %v1193_v39 }
0x15ad   :  { %v1200_v51 = vmul.f32 %v1326_v42, %v1194_v41 }
0x15af   :  { %v1201_v44 = vpack.c.bf16 %v1200_v51, %v1199_v43 }
0x15b1   :  { %1464 = vmatmul.mubr.msk.bf16.vlgmr.msra.gmra.mrb[20].mxu1 %vm115_vm2, %v1201_v44 }
0x1684   :  { %v1251_v45 = vpop.f32.mrb[20].mxu1 }
0x1685   :  { %1258 = vst [vmem:[#allocation8] sm:$0xff] %v1251_v45  ;;  %v1465_v57 = vpop.f32.mrb[21].mxu1 }
0x1686   :  { %v1254_v46 = vpop.f32.mrb[22].mxu1 }
0x1687   :  { %1259 = vst [vmem:[#allocation8 + $0x8] sm:$0xff] %v1254_v46  ;;  %v1466_v47 = vpop.f32.mrb[23].mxu1 }
0x1688   :  { %1671 = shalt.err (!%p1668_p0)
}
0x1689   :  { %s1672_s6 = scalar_lea.hbm %s1983_s3, 256 }
0x168a   :  { %p1673_p1 = scmp.ne.s32.totalorder %s1983_s3, %s1672_s6  ;;  %p1676_p2 = scmp.lt.u32.totalorder %s1672_s6, %s1983_s3 }
0x168c   :  { %p1678_p3 = pnand %p1676_p2, %p1673_p1 }
0x168e   :  { %1681 = shalt.err (!%p1678_p3)
}
0x168f   :  { %1271 = dma.vmem_to_hbm [thread:$0]  %s1266_s29, 256, %s1983_s3, [#allocation4], %s1690_s24, %s1690_s24, %s1691_s25  }
0x1690   :  { %1686 = dma.done.wait [#allocation4], 256  }
0x1691   :  { %1687 = vsyncadd [#allocation4], 4294967040 }
0x1692   :  { %1275 = vsyncpa [#allocation3], 1 }
0x1693   :  { %1276 = vsyncpa [#allocation6], 1 }
0x1694   :  { %1277 = vsyncpa [#allocation4], 1 }

</bundles_post_ra>
